<compile_context>
chip_gen: v7x
topology: tpu7x:2x2x1
jax: 0.10.0
libtpu: 0.0.40
codegen_flags: <defaults>
</compile_context>

<pallas_src>
import functools
import math

import jax
import jax.numpy as jnp
import numpy as np
from jax.experimental import pallas as pl
from jax.experimental.pallas import tpu as pltpu

_SSFC_EPS = 1.1920929e-07   # np.finfo(np.float32).eps, as in SSFC
_BN_EPS = 1e-5


# ----------------------------- kernel helpers ------------------------------

def _tree_sum(terms):
    """Pairwise (tree) sum of a static list of arrays (shorter VALU dep chain)."""
    terms = list(terms)
    while len(terms) > 1:
        nxt = [terms[i] + terms[i + 1] for i in range(0, len(terms) - 1, 2)]
        if len(terms) % 2:
            nxt.append(terms[-1])
        terms = nxt
    return terms[0]


def _pointwise(chunks, w_t):
    """1x1 conv in (C, HW) layout as unrolled VPU outer-product FMAs.

    chunks: list of (arr (c_i, HW), n_used) covering the input channels in
    order (lets us consume a split native/aux input without concatenating).
    w_t: (c_out, c_in_total).  Returns (c_out, HW) in f32.
    """
    terms = []
    ci = 0
    for arr, used in chunks:
        for c in range(used):
            terms.append(w_t[:, ci:ci + 1] * arr[c:c + 1, :])
            ci += 1
    assert ci == w_t.shape[1], "pointwise weight / input channel mismatch"
    return _tree_sum(terms)


def _msd_stage(chunks, wn_t, wdw_t, wpr_t, vecs, masks, *, H, W, dilation,
               cnat, caux, out_ch):
    """One (MSDConv_SSFC + outer BN + ReLU) stage on a (C, HW) sample.

    vecs columns: 0 bn1_scale, 1 bn1_bias, 2 bn2_scale, 3 bn2_bias,
                  4 ssfc_proj_bias, 5 outer_bn_scale, 6 outer_bn_bias.
    Returns (native_part (cnat, HW), used_aux_part (out_ch-cnat, HW)) so the
    channel concat of the reference code is never materialized.
    """
    assert cnat == caux, "ratio=2 depthwise grouping assumed"
    HW = H * W

    # ---- native branch: 1x1 conv + BN + ReLU ----
    x1 = _pointwise(chunks, wn_t)                                    # (cnat, HW)
    x1 = jnp.maximum(x1 * vecs[:cnat, 0:1] + vecs[:cnat, 1:2], 0.0)

    # ---- aux branch: depthwise 3x3, dilation=d, zero-pad=d ----
    # 9 lane-rolled taps, masked with precomputed validity masks (== zero pad).
    taps = []
    for ky in range(3):
        for kx in range(3):
            t = ky * 3 + kx
            s = (ky - 1) * dilation * W + (kx - 1) * dilation
            shifted = x1 if s == 0 else pltpu.roll(x1, shift=(-s) % HW, axis=1)
            taps.append(shifted * masks[t:t + 1, :] * wdw_t[:, t:t + 1])
    acc = _tree_sum(taps)                                            # (caux, HW)
    aux = jnp.maximum(acc * vecs[:caux, 2:3] + vecs[:caux, 3:4], 0.0)

    # ---- SSFC spatial-spectral attention ----
    q = jnp.mean(aux, axis=1, keepdims=True)                         # (caux, 1)
    k = _pointwise([(aux, caux)], wpr_t) + vecs[:caux, 4:5]
    sq = (k - q) * (k - q)
    sigma = jnp.sum(sq, axis=1, keepdims=True) * (1.0 / HW)          # (caux, 1)
    inv = pl.reciprocal(2.0 * sigma + _SSFC_EPS, approx=True)
    x2 = aux * jax.nn.sigmoid(sq * inv + 0.5)                        # (caux, HW)

    # ---- cat([x1, x2])[:out_ch] + outer BN + ReLU, without a concat ----
    aux_used = out_ch - cnat
    yn = jnp.maximum(x1 * vecs[:cnat, 5:6] + vecs[:cnat, 6:7], 0.0)
    ya = jnp.maximum(x2[:aux_used] * vecs[cnat:out_ch, 5:6]
                     + vecs[cnat:out_ch, 6:7], 0.0)
    return yn, ya


def _double_conv_kernel(x_ref, masks_ref,
                        wn1_ref, wdw1_ref, wpr1_ref, vec1_ref,
                        wn2_ref, wdw2_ref, wpr2_ref, vec2_ref,
                        o_ref, *, H, W, dilation, cfg1, cfg2):
    """One sample: full DoubleConv (two fused MSDConv_SSFC+BN+ReLU stages)."""
    x = x_ref[0].astype(jnp.float32)          # (Cin, HW), channels on sublanes
    masks = masks_ref[...]                    # (9, HW)

    # stage 1 — intermediate stays in VMEM/registers, no HBM roundtrip
    yn1, ya1 = _msd_stage([(x, x.shape[0])],
                          wn1_ref[...], wdw1_ref[...], wpr1_ref[...],
                          vec1_ref[...], masks,
                          H=H, W=W, dilation=dilation,
                          cnat=cfg1[0], caux=cfg1[1], out_ch=cfg1[2])

    # stage 2 — consumes stage-1 output as two channel chunks (native, aux)
    yn2, ya2 = _msd_stage([(yn1, cfg1[0]), (ya1, cfg1[2] - cfg1[0])],
                          wn2_ref[...], wdw2_ref[...], wpr2_ref[...],
                          vec2_ref[...], masks,
                          H=H, W=W, dilation=dilation,
                          cnat=cfg2[0], caux=cfg2[1], out_ch=cfg2[2])

    cnat2, _, out_ch = cfg2
    o_ref[0, :cnat2, :] = yn2.astype(o_ref.dtype)
    o_ref[0, cnat2:out_ch, :] = ya2.astype(o_ref.dtype)


# ------------------------------ host wrapper -------------------------------

def _tap_masks(H, W, dilation):
    """(9, H*W) f32 validity masks for the 9 dilated depthwise taps (zero pad)."""
    hh, ww = np.meshgrid(np.arange(H), np.arange(W), indexing="ij")
    rows = []
    for ky in range(3):
        for kx in range(3):
            dy = (ky - 1) * dilation
            dx = (kx - 1) * dilation
            valid = ((hh + dy >= 0) & (hh + dy < H)
                     & (ww + dx >= 0) & (ww + dx < W))
            rows.append(valid.reshape(-1).astype(np.float32))
    return jnp.asarray(np.stack(rows, axis=0))


def double_conv(x_nchw, params1, params2, dilation=3):
    """DoubleConv forward: (N, Cin, H, W) -> (N, out_ch, H, W), one fused call."""
    N, Cin, H, W = x_nchw.shape
    HW = H * W
    wn1, wdw1, wpr1, vec1 = params1
    wn2, wdw2, wpr2, vec2 = params2
    cfg1 = (wn1.shape[0], wpr1.shape[0], vec1.shape[0])   # (cnat, caux, out_ch)
    cfg2 = (wn2.shape[0], wpr2.shape[0], vec2.shape[0])
    out_ch = cfg2[2]
    assert wn2.shape[1] == cfg1[2], "stage-2 in_ch must equal stage-1 out_ch"

    # NCHW flattened over space is already channels-on-sublanes / HW-on-lanes:
    # no host transpose needed for the (C, HW) in-kernel layout.
    x = x_nchw.reshape(N, Cin, HW)
    masks = _tap_masks(H, W, dilation)

    kernel = functools.partial(_double_conv_kernel, H=H, W=W,
                               dilation=dilation, cfg1=cfg1, cfg2=cfg2)

    def full(a):
        return pl.BlockSpec(a.shape, lambda b, _n=a.ndim: (0,) * _n)

    # TODO(synk): for production-scale inputs (e.g. 256x256x32) add haloed row
    # tiling with a two-pass SSFC (sum / sum-of-squares accumulated across row
    # tiles) so the per-sample working set fits v7x's 64 MiB VMEM.
    y = pl.pallas_call(
        kernel,
        out_shape=jax.ShapeDtypeStruct((N, out_ch, HW), jnp.float32),
        grid_spec=pltpu.PrefetchScalarGridSpec(
            num_scalar_prefetch=0,
            grid=(N,),
            in_specs=[pl.BlockSpec((1, Cin, HW), lambda b: (b, 0, 0)),
                      full(masks),
                      full(wn1), full(wdw1), full(wpr1), full(vec1),
                      full(wn2), full(wdw2), full(wpr2), full(vec2)],
            out_specs=pl.BlockSpec((1, out_ch, HW), lambda b: (b, 0, 0)),
        ),
        compiler_params=pltpu.CompilerParams(
            dimension_semantics=("parallel",),
            vmem_limit_bytes=48 * 1024 * 1024),
    )(x, masks, wn1, wdw1, wpr1, vec1, wn2, wdw2, wpr2, vec2)
    return y.reshape(N, out_ch, H, W)


# ------------------------------ parameters ---------------------------------

def _fold_bn(key, c):
    """Deterministic BN params (gamma/beta/running stats) folded to scale/bias."""
    k1, k2, k3, k4 = jax.random.split(key, 4)
    gamma = 1.0 + 0.1 * jax.random.normal(k1, (c,), jnp.float32)
    beta = 0.1 * jax.random.normal(k2, (c,), jnp.float32)
    mean = 0.1 * jax.random.normal(k3, (c,), jnp.float32)
    var = 0.5 + jnp.abs(jax.random.normal(k4, (c,), jnp.float32))
    scale = gamma / jnp.sqrt(var + _BN_EPS)
    bias = beta - mean * scale
    return scale, bias


def make_stage_params(key, in_ch, out_ch, ratio=2):
    """Params for one (MSDConv_SSFC + BatchNorm2d + ReLU) stage (ratio=2)."""
    assert ratio == 2, "depthwise grouping implemented for ratio=2"
    cnat = math.ceil(out_ch / ratio)
    caux = cnat * (ratio - 1)                 # == cnat
    ks = jax.random.split(key, 7)
    wn_t = 0.3 * jax.random.normal(ks[0], (cnat, in_ch), jnp.float32)   # 1x1 native (transposed)
    wdw_t = 0.3 * jax.random.normal(ks[1], (cnat, 9), jnp.float32)      # depthwise taps per channel
    wpr_t = 0.3 * jax.random.normal(ks[2], (caux, caux), jnp.float32)   # SSFC proj 1x1 (transposed)
    bpr = 0.1 * jax.random.normal(ks[3], (caux,), jnp.float32)          # SSFC proj bias
    bn1s, bn1b = _fold_bn(ks[4], cnat)        # BN inside native branch
    bn2s, bn2b = _fold_bn(ks[5], caux)        # BN inside aux branch
    bnos, bnob = _fold_bn(ks[6], out_ch)      # DoubleConv's outer BN

    cvec = max(cnat, caux, out_ch)
    pad = lambda v: jnp.pad(v, (0, cvec - v.shape[0]))
    vecs = jnp.stack([pad(bn1s), pad(bn1b), pad(bn2s), pad(bn2b),
                      pad(bpr), pad(bnos), pad(bnob)], axis=1)          # (cvec, 7)
    return (wn_t, wdw_t, wpr_t, vecs)


# --------------------------------- main -------------------------------------

if __name__ == "__main__":
    key = jax.random.PRNGKey(0)
    kx, k1, k2 = jax.random.split(key, 3)
    N, in_ch, out_ch, H, W = 2, 4, 8, 16, 16
    x = jax.random.normal(kx, (N, in_ch, H, W), jnp.float32)
    p1 = make_stage_params(k1, in_ch, out_ch)    # MSDConv_SSFC(in_ch, out_ch)+BN+ReLU
    p2 = make_stage_params(k2, out_ch, out_ch)   # MSDConv_SSFC(out_ch, out_ch)+BN+ReLU
    out = jax.block_until_ready(double_conv(x, p1, p2))
    assert out.shape == (N, out_ch, H, W) and out.dtype == jnp.float32
    assert bool(jnp.all(jnp.isfinite(out)))
    print("KERNEL_OK")
</pallas_src>

<mosaic_0001>
module attributes {stable_mosaic.version = 11 : i64} {
  func.func @_double_conv_kernel(%arg0: i32, %arg1: memref<1x4x256xf32, #tpu.memory_space<vmem>>, %arg2: memref<9x256xf32, #tpu.memory_space<vmem>>, %arg3: memref<4x4xf32, #tpu.memory_space<vmem>>, %arg4: memref<4x9xf32, #tpu.memory_space<vmem>>, %arg5: memref<4x4xf32, #tpu.memory_space<vmem>>, %arg6: memref<8x7xf32, #tpu.memory_space<vmem>>, %arg7: memref<4x8xf32, #tpu.memory_space<vmem>>, %arg8: memref<4x9xf32, #tpu.memory_space<vmem>>, %arg9: memref<4x4xf32, #tpu.memory_space<vmem>>, %arg10: memref<8x7xf32, #tpu.memory_space<vmem>>, %arg11: memref<1x8x256xf32, #tpu.memory_space<vmem>>) attributes {dimension_semantics = [#tpu.dimension_semantics<parallel>], iteration_bounds = array<i64: 2>, scalar_prefetch = 0 : i64, scratch_operands = 0 : i64, tpu.core_type = #tpu.core_type<tc>, window_params = [{transform_indices = @transform_0, window_bounds = array<i64: 1, 4, 256>}, {pipeline_mode = #tpu.pipeline_mode<synchronous>, transform_indices = @transform_1, window_bounds = array<i64: 9, 256>}, {pipeline_mode = #tpu.pipeline_mode<synchronous>, transform_indices = @transform_2, window_bounds = array<i64: 4, 4>}, {pipeline_mode = #tpu.pipeline_mode<synchronous>, transform_indices = @transform_3, window_bounds = array<i64: 4, 9>}, {pipeline_mode = #tpu.pipeline_mode<synchronous>, transform_indices = @transform_4, window_bounds = array<i64: 4, 4>}, {pipeline_mode = #tpu.pipeline_mode<synchronous>, transform_indices = @transform_5, window_bounds = array<i64: 8, 7>}, {pipeline_mode = #tpu.pipeline_mode<synchronous>, transform_indices = @transform_6, window_bounds = array<i64: 4, 8>}, {pipeline_mode = #tpu.pipeline_mode<synchronous>, transform_indices = @transform_7, window_bounds = array<i64: 4, 9>}, {pipeline_mode = #tpu.pipeline_mode<synchronous>, transform_indices = @transform_8, window_bounds = array<i64: 4, 4>}, {pipeline_mode = #tpu.pipeline_mode<synchronous>, transform_indices = @transform_9, window_bounds = array<i64: 8, 7>}, {transform_indices = @transform_10, window_bounds = array<i64: 1, 8, 256>}]} {
    %c0 = arith.constant 0 : index
    %c0_0 = arith.constant 0 : index
    %c0_1 = arith.constant 0 : index
    %0 = vector.load %arg1[%c0, %c0_0, %c0_1] : memref<1x4x256xf32, #tpu.memory_space<vmem>>, vector<1x4x256xf32>
    %1 = vector.shape_cast %0 : vector<1x4x256xf32> to vector<4x256xf32>
    %c0_2 = arith.constant 0 : index
    %c0_3 = arith.constant 0 : index
    %2 = vector.load %arg2[%c0_2, %c0_3] : memref<9x256xf32, #tpu.memory_space<vmem>>, vector<9x256xf32>
    %c0_4 = arith.constant 0 : index
    %c0_5 = arith.constant 0 : index
    %3 = vector.load %arg3[%c0_4, %c0_5] : memref<4x4xf32, #tpu.memory_space<vmem>>, vector<4x4xf32>
    %c0_6 = arith.constant 0 : index
    %c0_7 = arith.constant 0 : index
    %4 = vector.load %arg4[%c0_6, %c0_7] : memref<4x9xf32, #tpu.memory_space<vmem>>, vector<4x9xf32>
    %c0_8 = arith.constant 0 : index
    %c0_9 = arith.constant 0 : index
    %5 = vector.load %arg5[%c0_8, %c0_9] : memref<4x4xf32, #tpu.memory_space<vmem>>, vector<4x4xf32>
    %c0_10 = arith.constant 0 : index
    %c0_11 = arith.constant 0 : index
    %6 = vector.load %arg6[%c0_10, %c0_11] : memref<8x7xf32, #tpu.memory_space<vmem>>, vector<8x7xf32>
    %7 = vector.extract_strided_slice %3 {offsets = [0, 0], sizes = [4, 1], strides = [1, 1]} : vector<4x4xf32> to vector<4x1xf32>
    %8 = vector.extract_strided_slice %1 {offsets = [0, 0], sizes = [1, 256], strides = [1, 1]} : vector<4x256xf32> to vector<1x256xf32>
    %9 = vector.broadcast %7 : vector<4x1xf32> to vector<4x256xf32>
    %10 = vector.broadcast %8 : vector<1x256xf32> to vector<4x256xf32>
    %11 = arith.mulf %9, %10 : vector<4x256xf32>
    %12 = vector.extract_strided_slice %3 {offsets = [0, 1], sizes = [4, 1], strides = [1, 1]} : vector<4x4xf32> to vector<4x1xf32>
    %13 = vector.extract_strided_slice %1 {offsets = [1, 0], sizes = [1, 256], strides = [1, 1]} : vector<4x256xf32> to vector<1x256xf32>
    %14 = vector.broadcast %12 : vector<4x1xf32> to vector<4x256xf32>
    %15 = vector.broadcast %13 : vector<1x256xf32> to vector<4x256xf32>
    %16 = arith.mulf %14, %15 : vector<4x256xf32>
    %17 = vector.extract_strided_slice %3 {offsets = [0, 2], sizes = [4, 1], strides = [1, 1]} : vector<4x4xf32> to vector<4x1xf32>
    %18 = vector.extract_strided_slice %1 {offsets = [2, 0], sizes = [1, 256], strides = [1, 1]} : vector<4x256xf32> to vector<1x256xf32>
    %19 = vector.broadcast %17 : vector<4x1xf32> to vector<4x256xf32>
    %20 = vector.broadcast %18 : vector<1x256xf32> to vector<4x256xf32>
    %21 = arith.mulf %19, %20 : vector<4x256xf32>
    %22 = vector.extract_strided_slice %3 {offsets = [0, 3], sizes = [4, 1], strides = [1, 1]} : vector<4x4xf32> to vector<4x1xf32>
    %23 = vector.extract_strided_slice %1 {offsets = [3, 0], sizes = [1, 256], strides = [1, 1]} : vector<4x256xf32> to vector<1x256xf32>
    %24 = vector.broadcast %22 : vector<4x1xf32> to vector<4x256xf32>
    %25 = vector.broadcast %23 : vector<1x256xf32> to vector<4x256xf32>
    %26 = arith.mulf %24, %25 : vector<4x256xf32>
    %27 = arith.addf %11, %16 : vector<4x256xf32>
    %28 = arith.addf %21, %26 : vector<4x256xf32>
    %29 = arith.addf %27, %28 : vector<4x256xf32>
    %30 = vector.extract_strided_slice %6 {offsets = [0, 0], sizes = [4, 1], strides = [1, 1]} : vector<8x7xf32> to vector<4x1xf32>
    %31 = vector.broadcast %30 : vector<4x1xf32> to vector<4x256xf32>
    %32 = arith.mulf %29, %31 : vector<4x256xf32>
    %33 = vector.extract_strided_slice %6 {offsets = [0, 1], sizes = [4, 1], strides = [1, 1]} : vector<8x7xf32> to vector<4x1xf32>
    %34 = vector.broadcast %33 : vector<4x1xf32> to vector<4x256xf32>
    %35 = arith.addf %32, %34 : vector<4x256xf32>
    %cst = arith.constant 0.000000e+00 : f32
    %36 = vector.broadcast %cst : f32 to vector<4x256xf32>
    %37 = arith.maximumf %35, %36 : vector<4x256xf32>
    %c51_i32 = arith.constant 51 : i32
    %38 = tpu.dynamic_rotate %37 by %c51_i32 dim 1 : vector<4x256xf32>, i32 -> vector<4x256xf32>
    %39 = vector.extract_strided_slice %2 {offsets = [0, 0], sizes = [1, 256], strides = [1, 1]} : vector<9x256xf32> to vector<1x256xf32>
    %40 = vector.broadcast %39 : vector<1x256xf32> to vector<4x256xf32>
    %41 = arith.mulf %38, %40 : vector<4x256xf32>
    %42 = vector.extract_strided_slice %4 {offsets = [0, 0], sizes = [4, 1], strides = [1, 1]} : vector<4x9xf32> to vector<4x1xf32>
    %43 = vector.broadcast %42 : vector<4x1xf32> to vector<4x256xf32>
    %44 = arith.mulf %41, %43 : vector<4x256xf32>
    %c48_i32 = arith.constant 48 : i32
    %45 = tpu.dynamic_rotate %37 by %c48_i32 dim 1 : vector<4x256xf32>, i32 -> vector<4x256xf32>
    %46 = vector.extract_strided_slice %2 {offsets = [1, 0], sizes = [1, 256], strides = [1, 1]} : vector<9x256xf32> to vector<1x256xf32>
    %47 = vector.broadcast %46 : vector<1x256xf32> to vector<4x256xf32>
    %48 = arith.mulf %45, %47 : vector<4x256xf32>
    %49 = vector.extract_strided_slice %4 {offsets = [0, 1], sizes = [4, 1], strides = [1, 1]} : vector<4x9xf32> to vector<4x1xf32>
    %50 = vector.broadcast %49 : vector<4x1xf32> to vector<4x256xf32>
    %51 = arith.mulf %48, %50 : vector<4x256xf32>
    %c45_i32 = arith.constant 45 : i32
    %52 = tpu.dynamic_rotate %37 by %c45_i32 dim 1 : vector<4x256xf32>, i32 -> vector<4x256xf32>
    %53 = vector.extract_strided_slice %2 {offsets = [2, 0], sizes = [1, 256], strides = [1, 1]} : vector<9x256xf32> to vector<1x256xf32>
    %54 = vector.broadcast %53 : vector<1x256xf32> to vector<4x256xf32>
    %55 = arith.mulf %52, %54 : vector<4x256xf32>
    %56 = vector.extract_strided_slice %4 {offsets = [0, 2], sizes = [4, 1], strides = [1, 1]} : vector<4x9xf32> to vector<4x1xf32>
    %57 = vector.broadcast %56 : vector<4x1xf32> to vector<4x256xf32>
    %58 = arith.mulf %55, %57 : vector<4x256xf32>
    %c3_i32 = arith.constant 3 : i32
    %59 = tpu.dynamic_rotate %37 by %c3_i32 dim 1 : vector<4x256xf32>, i32 -> vector<4x256xf32>
    %60 = vector.extract_strided_slice %2 {offsets = [3, 0], sizes = [1, 256], strides = [1, 1]} : vector<9x256xf32> to vector<1x256xf32>
    %61 = vector.broadcast %60 : vector<1x256xf32> to vector<4x256xf32>
    %62 = arith.mulf %59, %61 : vector<4x256xf32>
    %63 = vector.extract_strided_slice %4 {offsets = [0, 3], sizes = [4, 1], strides = [1, 1]} : vector<4x9xf32> to vector<4x1xf32>
    %64 = vector.broadcast %63 : vector<4x1xf32> to vector<4x256xf32>
    %65 = arith.mulf %62, %64 : vector<4x256xf32>
    %66 = vector.extract_strided_slice %2 {offsets = [4, 0], sizes = [1, 256], strides = [1, 1]} : vector<9x256xf32> to vector<1x256xf32>
    %67 = vector.broadcast %66 : vector<1x256xf32> to vector<4x256xf32>
    %68 = arith.mulf %37, %67 : vector<4x256xf32>
    %69 = vector.extract_strided_slice %4 {offsets = [0, 4], sizes = [4, 1], strides = [1, 1]} : vector<4x9xf32> to vector<4x1xf32>
    %70 = vector.broadcast %69 : vector<4x1xf32> to vector<4x256xf32>
    %71 = arith.mulf %68, %70 : vector<4x256xf32>
    %c253_i32 = arith.constant 253 : i32
    %72 = tpu.dynamic_rotate %37 by %c253_i32 dim 1 : vector<4x256xf32>, i32 -> vector<4x256xf32>
    %73 = vector.extract_strided_slice %2 {offsets = [5, 0], sizes = [1, 256], strides = [1, 1]} : vector<9x256xf32> to vector<1x256xf32>
    %74 = vector.broadcast %73 : vector<1x256xf32> to vector<4x256xf32>
    %75 = arith.mulf %72, %74 : vector<4x256xf32>
    %76 = vector.extract_strided_slice %4 {offsets = [0, 5], sizes = [4, 1], strides = [1, 1]} : vector<4x9xf32> to vector<4x1xf32>
    %77 = vector.broadcast %76 : vector<4x1xf32> to vector<4x256xf32>
    %78 = arith.mulf %75, %77 : vector<4x256xf32>
    %c211_i32 = arith.constant 211 : i32
    %79 = tpu.dynamic_rotate %37 by %c211_i32 dim 1 : vector<4x256xf32>, i32 -> vector<4x256xf32>
    %80 = vector.extract_strided_slice %2 {offsets = [6, 0], sizes = [1, 256], strides = [1, 1]} : vector<9x256xf32> to vector<1x256xf32>
    %81 = vector.broadcast %80 : vector<1x256xf32> to vector<4x256xf32>
    %82 = arith.mulf %79, %81 : vector<4x256xf32>
    %83 = vector.extract_strided_slice %4 {offsets = [0, 6], sizes = [4, 1], strides = [1, 1]} : vector<4x9xf32> to vector<4x1xf32>
    %84 = vector.broadcast %83 : vector<4x1xf32> to vector<4x256xf32>
    %85 = arith.mulf %82, %84 : vector<4x256xf32>
    %c208_i32 = arith.constant 208 : i32
    %86 = tpu.dynamic_rotate %37 by %c208_i32 dim 1 : vector<4x256xf32>, i32 -> vector<4x256xf32>
    %87 = vector.extract_strided_slice %2 {offsets = [7, 0], sizes = [1, 256], strides = [1, 1]} : vector<9x256xf32> to vector<1x256xf32>
    %88 = vector.broadcast %87 : vector<1x256xf32> to vector<4x256xf32>
    %89 = arith.mulf %86, %88 : vector<4x256xf32>
    %90 = vector.extract_strided_slice %4 {offsets = [0, 7], sizes = [4, 1], strides = [1, 1]} : vector<4x9xf32> to vector<4x1xf32>
    %91 = vector.broadcast %90 : vector<4x1xf32> to vector<4x256xf32>
    %92 = arith.mulf %89, %91 : vector<4x256xf32>
    %c205_i32 = arith.constant 205 : i32
    %93 = tpu.dynamic_rotate %37 by %c205_i32 dim 1 : vector<4x256xf32>, i32 -> vector<4x256xf32>
    %94 = vector.extract_strided_slice %2 {offsets = [8, 0], sizes = [1, 256], strides = [1, 1]} : vector<9x256xf32> to vector<1x256xf32>
    %95 = vector.broadcast %94 : vector<1x256xf32> to vector<4x256xf32>
    %96 = arith.mulf %93, %95 : vector<4x256xf32>
    %97 = vector.extract_strided_slice %4 {offsets = [0, 8], sizes = [4, 1], strides = [1, 1]} : vector<4x9xf32> to vector<4x1xf32>
    %98 = vector.broadcast %97 : vector<4x1xf32> to vector<4x256xf32>
    %99 = arith.mulf %96, %98 : vector<4x256xf32>
    %100 = arith.addf %44, %51 : vector<4x256xf32>
    %101 = arith.addf %58, %65 : vector<4x256xf32>
    %102 = arith.addf %71, %78 : vector<4x256xf32>
    %103 = arith.addf %85, %92 : vector<4x256xf32>
    %104 = arith.addf %100, %101 : vector<4x256xf32>
    %105 = arith.addf %102, %103 : vector<4x256xf32>
    %106 = arith.addf %104, %105 : vector<4x256xf32>
    %107 = arith.addf %106, %99 : vector<4x256xf32>
    %108 = vector.extract_strided_slice %6 {offsets = [0, 2], sizes = [4, 1], strides = [1, 1]} : vector<8x7xf32> to vector<4x1xf32>
    %109 = vector.broadcast %108 : vector<4x1xf32> to vector<4x256xf32>
    %110 = arith.mulf %107, %109 : vector<4x256xf32>
    %111 = vector.extract_strided_slice %6 {offsets = [0, 3], sizes = [4, 1], strides = [1, 1]} : vector<8x7xf32> to vector<4x1xf32>
    %112 = vector.broadcast %111 : vector<4x1xf32> to vector<4x256xf32>
    %113 = arith.addf %110, %112 : vector<4x256xf32>
    %cst_12 = arith.constant 0.000000e+00 : f32
    %114 = vector.broadcast %cst_12 : f32 to vector<4x256xf32>
    %115 = arith.maximumf %113, %114 : vector<4x256xf32>
    %cst_13 = arith.constant dense<0.000000e+00> : vector<4xf32>
    %116 = vector.multi_reduction <add>, %115, %cst_13 [1] : vector<4x256xf32> to vector<4xf32>
    %117 = vector.shape_cast %116 : vector<4xf32> to vector<4x1xf32>
    %cst_14 = arith.constant 2.560000e+02 : f32
    %118 = vector.broadcast %cst_14 : f32 to vector<4x1xf32>
    %119 = arith.divf %117, %118 : vector<4x1xf32>
    %120 = vector.extract_strided_slice %5 {offsets = [0, 0], sizes = [4, 1], strides = [1, 1]} : vector<4x4xf32> to vector<4x1xf32>
    %121 = vector.extract_strided_slice %115 {offsets = [0, 0], sizes = [1, 256], strides = [1, 1]} : vector<4x256xf32> to vector<1x256xf32>
    %122 = vector.broadcast %120 : vector<4x1xf32> to vector<4x256xf32>
    %123 = vector.broadcast %121 : vector<1x256xf32> to vector<4x256xf32>
    %124 = arith.mulf %122, %123 : vector<4x256xf32>
    %125 = vector.extract_strided_slice %5 {offsets = [0, 1], sizes = [4, 1], strides = [1, 1]} : vector<4x4xf32> to vector<4x1xf32>
    %126 = vector.extract_strided_slice %115 {offsets = [1, 0], sizes = [1, 256], strides = [1, 1]} : vector<4x256xf32> to vector<1x256xf32>
    %127 = vector.broadcast %125 : vector<4x1xf32> to vector<4x256xf32>
    %128 = vector.broadcast %126 : vector<1x256xf32> to vector<4x256xf32>
    %129 = arith.mulf %127, %128 : vector<4x256xf32>
    %130 = vector.extract_strided_slice %5 {offsets = [0, 2], sizes = [4, 1], strides = [1, 1]} : vector<4x4xf32> to vector<4x1xf32>
    %131 = vector.extract_strided_slice %115 {offsets = [2, 0], sizes = [1, 256], strides = [1, 1]} : vector<4x256xf32> to vector<1x256xf32>
    %132 = vector.broadcast %130 : vector<4x1xf32> to vector<4x256xf32>
    %133 = vector.broadcast %131 : vector<1x256xf32> to vector<4x256xf32>
    %134 = arith.mulf %132, %133 : vector<4x256xf32>
    %135 = vector.extract_strided_slice %5 {offsets = [0, 3], sizes = [4, 1], strides = [1, 1]} : vector<4x4xf32> to vector<4x1xf32>
    %136 = vector.extract_strided_slice %115 {offsets = [3, 0], sizes = [1, 256], strides = [1, 1]} : vector<4x256xf32> to vector<1x256xf32>
    %137 = vector.broadcast %135 : vector<4x1xf32> to vector<4x256xf32>
    %138 = vector.broadcast %136 : vector<1x256xf32> to vector<4x256xf32>
    %139 = arith.mulf %137, %138 : vector<4x256xf32>
    %140 = arith.addf %124, %129 : vector<4x256xf32>
    %141 = arith.addf %134, %139 : vector<4x256xf32>
    %142 = arith.addf %140, %141 : vector<4x256xf32>
    %143 = vector.extract_strided_slice %6 {offsets = [0, 4], sizes = [4, 1], strides = [1, 1]} : vector<8x7xf32> to vector<4x1xf32>
    %144 = vector.broadcast %143 : vector<4x1xf32> to vector<4x256xf32>
    %145 = arith.addf %142, %144 : vector<4x256xf32>
    %146 = vector.broadcast %119 : vector<4x1xf32> to vector<4x256xf32>
    %147 = arith.subf %145, %146 : vector<4x256xf32>
    %148 = vector.broadcast %119 : vector<4x1xf32> to vector<4x256xf32>
    %149 = arith.subf %145, %148 : vector<4x256xf32>
    %150 = arith.mulf %147, %149 : vector<4x256xf32>
    %cst_15 = arith.constant dense<0.000000e+00> : vector<4xf32>
    %151 = vector.multi_reduction <add>, %150, %cst_15 [1] : vector<4x256xf32> to vector<4xf32>
    %152 = vector.shape_cast %151 : vector<4xf32> to vector<4x1xf32>
    %cst_16 = arith.constant 3.906250e-03 : f32
    %153 = vector.broadcast %cst_16 : f32 to vector<4x1xf32>
    %154 = arith.mulf %152, %153 : vector<4x1xf32>
    %cst_17 = arith.constant 2.000000e+00 : f32
    %155 = vector.broadcast %cst_17 : f32 to vector<4x1xf32>
    %156 = arith.mulf %155, %154 : vector<4x1xf32>
    %cst_18 = arith.constant 1.1920929E-7 : f32
    %157 = vector.broadcast %cst_18 : f32 to vector<4x1xf32>
    %158 = arith.addf %156, %157 : vector<4x1xf32>
    %159 = tpu.reciprocal %158 {approx = true} : vector<4x1xf32> -> vector<4x1xf32>
    %160 = vector.broadcast %159 : vector<4x1xf32> to vector<4x256xf32>
    %161 = arith.mulf %150, %160 : vector<4x256xf32>
    %cst_19 = arith.constant 5.000000e-01 : f32
    %162 = vector.broadcast %cst_19 : f32 to vector<4x256xf32>
    %163 = arith.addf %161, %162 : vector<4x256xf32>
    %164 = arith.negf %163 : vector<4x256xf32>
    %165 = math.exp %164 : vector<4x256xf32>
    %cst_20 = arith.constant 1.000000e+00 : f32
    %166 = vector.broadcast %cst_20 : f32 to vector<4x256xf32>
    %167 = arith.addf %166, %165 : vector<4x256xf32>
    %168 = arith.divf %166, %167 : vector<4x256xf32>
    %169 = arith.mulf %115, %168 : vector<4x256xf32>
    %170 = vector.extract_strided_slice %6 {offsets = [0, 5], sizes = [4, 1], strides = [1, 1]} : vector<8x7xf32> to vector<4x1xf32>
    %171 = vector.broadcast %170 : vector<4x1xf32> to vector<4x256xf32>
    %172 = arith.mulf %37, %171 : vector<4x256xf32>
    %173 = vector.extract_strided_slice %6 {offsets = [0, 6], sizes = [4, 1], strides = [1, 1]} : vector<8x7xf32> to vector<4x1xf32>
    %174 = vector.broadcast %173 : vector<4x1xf32> to vector<4x256xf32>
    %175 = arith.addf %172, %174 : vector<4x256xf32>
    %cst_21 = arith.constant 0.000000e+00 : f32
    %176 = vector.broadcast %cst_21 : f32 to vector<4x256xf32>
    %177 = arith.maximumf %175, %176 : vector<4x256xf32>
    %178 = vector.extract_strided_slice %6 {offsets = [4, 5], sizes = [4, 1], strides = [1, 1]} : vector<8x7xf32> to vector<4x1xf32>
    %179 = vector.broadcast %178 : vector<4x1xf32> to vector<4x256xf32>
    %180 = arith.mulf %169, %179 : vector<4x256xf32>
    %181 = vector.extract_strided_slice %6 {offsets = [4, 6], sizes = [4, 1], strides = [1, 1]} : vector<8x7xf32> to vector<4x1xf32>
    %182 = vector.broadcast %181 : vector<4x1xf32> to vector<4x256xf32>
    %183 = arith.addf %180, %182 : vector<4x256xf32>
    %cst_22 = arith.constant 0.000000e+00 : f32
    %184 = vector.broadcast %cst_22 : f32 to vector<4x256xf32>
    %185 = arith.maximumf %183, %184 : vector<4x256xf32>
    %c0_23 = arith.constant 0 : index
    %c0_24 = arith.constant 0 : index
    %186 = vector.load %arg7[%c0_23, %c0_24] : memref<4x8xf32, #tpu.memory_space<vmem>>, vector<4x8xf32>
    %c0_25 = arith.constant 0 : index
    %c0_26 = arith.constant 0 : index
    %187 = vector.load %arg8[%c0_25, %c0_26] : memref<4x9xf32, #tpu.memory_space<vmem>>, vector<4x9xf32>
    %c0_27 = arith.constant 0 : index
    %c0_28 = arith.constant 0 : index
    %188 = vector.load %arg9[%c0_27, %c0_28] : memref<4x4xf32, #tpu.memory_space<vmem>>, vector<4x4xf32>
    %c0_29 = arith.constant 0 : index
    %c0_30 = arith.constant 0 : index
    %189 = vector.load %arg10[%c0_29, %c0_30] : memref<8x7xf32, #tpu.memory_space<vmem>>, vector<8x7xf32>
    %190 = vector.extract_strided_slice %186 {offsets = [0, 0], sizes = [4, 1], strides = [1, 1]} : vector<4x8xf32> to vector<4x1xf32>
    %191 = vector.extract_strided_slice %177 {offsets = [0, 0], sizes = [1, 256], strides = [1, 1]} : vector<4x256xf32> to vector<1x256xf32>
    %192 = vector.broadcast %190 : vector<4x1xf32> to vector<4x256xf32>
    %193 = vector.broadcast %191 : vector<1x256xf32> to vector<4x256xf32>
    %194 = arith.mulf %192, %193 : vector<4x256xf32>
    %195 = vector.extract_strided_slice %186 {offsets = [0, 1], sizes = [4, 1], strides = [1, 1]} : vector<4x8xf32> to vector<4x1xf32>
    %196 = vector.extract_strided_slice %177 {offsets = [1, 0], sizes = [1, 256], strides = [1, 1]} : vector<4x256xf32> to vector<1x256xf32>
    %197 = vector.broadcast %195 : vector<4x1xf32> to vector<4x256xf32>
    %198 = vector.broadcast %196 : vector<1x256xf32> to vector<4x256xf32>
    %199 = arith.mulf %197, %198 : vector<4x256xf32>
    %200 = vector.extract_strided_slice %186 {offsets = [0, 2], sizes = [4, 1], strides = [1, 1]} : vector<4x8xf32> to vector<4x1xf32>
    %201 = vector.extract_strided_slice %177 {offsets = [2, 0], sizes = [1, 256], strides = [1, 1]} : vector<4x256xf32> to vector<1x256xf32>
    %202 = vector.broadcast %200 : vector<4x1xf32> to vector<4x256xf32>
    %203 = vector.broadcast %201 : vector<1x256xf32> to vector<4x256xf32>
    %204 = arith.mulf %202, %203 : vector<4x256xf32>
    %205 = vector.extract_strided_slice %186 {offsets = [0, 3], sizes = [4, 1], strides = [1, 1]} : vector<4x8xf32> to vector<4x1xf32>
    %206 = vector.extract_strided_slice %177 {offsets = [3, 0], sizes = [1, 256], strides = [1, 1]} : vector<4x256xf32> to vector<1x256xf32>
    %207 = vector.broadcast %205 : vector<4x1xf32> to vector<4x256xf32>
    %208 = vector.broadcast %206 : vector<1x256xf32> to vector<4x256xf32>
    %209 = arith.mulf %207, %208 : vector<4x256xf32>
    %210 = vector.extract_strided_slice %186 {offsets = [0, 4], sizes = [4, 1], strides = [1, 1]} : vector<4x8xf32> to vector<4x1xf32>
    %211 = vector.extract_strided_slice %185 {offsets = [0, 0], sizes = [1, 256], strides = [1, 1]} : vector<4x256xf32> to vector<1x256xf32>
    %212 = vector.broadcast %210 : vector<4x1xf32> to vector<4x256xf32>
    %213 = vector.broadcast %211 : vector<1x256xf32> to vector<4x256xf32>
    %214 = arith.mulf %212, %213 : vector<4x256xf32>
    %215 = vector.extract_strided_slice %186 {offsets = [0, 5], sizes = [4, 1], strides = [1, 1]} : vector<4x8xf32> to vector<4x1xf32>
    %216 = vector.extract_strided_slice %185 {offsets = [1, 0], sizes = [1, 256], strides = [1, 1]} : vector<4x256xf32> to vector<1x256xf32>
    %217 = vector.broadcast %215 : vector<4x1xf32> to vector<4x256xf32>
    %218 = vector.broadcast %216 : vector<1x256xf32> to vector<4x256xf32>
    %219 = arith.mulf %217, %218 : vector<4x256xf32>
    %220 = vector.extract_strided_slice %186 {offsets = [0, 6], sizes = [4, 1], strides = [1, 1]} : vector<4x8xf32> to vector<4x1xf32>
    %221 = vector.extract_strided_slice %185 {offsets = [2, 0], sizes = [1, 256], strides = [1, 1]} : vector<4x256xf32> to vector<1x256xf32>
    %222 = vector.broadcast %220 : vector<4x1xf32> to vector<4x256xf32>
    %223 = vector.broadcast %221 : vector<1x256xf32> to vector<4x256xf32>
    %224 = arith.mulf %222, %223 : vector<4x256xf32>
    %225 = vector.extract_strided_slice %186 {offsets = [0, 7], sizes = [4, 1], strides = [1, 1]} : vector<4x8xf32> to vector<4x1xf32>
    %226 = vector.extract_strided_slice %185 {offsets = [3, 0], sizes = [1, 256], strides = [1, 1]} : vector<4x256xf32> to vector<1x256xf32>
    %227 = vector.broadcast %225 : vector<4x1xf32> to vector<4x256xf32>
    %228 = vector.broadcast %226 : vector<1x256xf32> to vector<4x256xf32>
    %229 = arith.mulf %227, %228 : vector<4x256xf32>
    %230 = arith.addf %194, %199 : vector<4x256xf32>
    %231 = arith.addf %204, %209 : vector<4x256xf32>
    %232 = arith.addf %214, %219 : vector<4x256xf32>
    %233 = arith.addf %224, %229 : vector<4x256xf32>
    %234 = arith.addf %230, %231 : vector<4x256xf32>
    %235 = arith.addf %232, %233 : vector<4x256xf32>
    %236 = arith.addf %234, %235 : vector<4x256xf32>
    %237 = vector.extract_strided_slice %189 {offsets = [0, 0], sizes = [4, 1], strides = [1, 1]} : vector<8x7xf32> to vector<4x1xf32>
    %238 = vector.broadcast %237 : vector<4x1xf32> to vector<4x256xf32>
    %239 = arith.mulf %236, %238 : vector<4x256xf32>
    %240 = vector.extract_strided_slice %189 {offsets = [0, 1], sizes = [4, 1], strides = [1, 1]} : vector<8x7xf32> to vector<4x1xf32>
    %241 = vector.broadcast %240 : vector<4x1xf32> to vector<4x256xf32>
    %242 = arith.addf %239, %241 : vector<4x256xf32>
    %cst_31 = arith.constant 0.000000e+00 : f32
    %243 = vector.broadcast %cst_31 : f32 to vector<4x256xf32>
    %244 = arith.maximumf %242, %243 : vector<4x256xf32>
    %c51_i32_32 = arith.constant 51 : i32
    %245 = tpu.dynamic_rotate %244 by %c51_i32_32 dim 1 : vector<4x256xf32>, i32 -> vector<4x256xf32>
    %246 = vector.extract_strided_slice %2 {offsets = [0, 0], sizes = [1, 256], strides = [1, 1]} : vector<9x256xf32> to vector<1x256xf32>
    %247 = vector.broadcast %246 : vector<1x256xf32> to vector<4x256xf32>
    %248 = arith.mulf %245, %247 : vector<4x256xf32>
    %249 = vector.extract_strided_slice %187 {offsets = [0, 0], sizes = [4, 1], strides = [1, 1]} : vector<4x9xf32> to vector<4x1xf32>
    %250 = vector.broadcast %249 : vector<4x1xf32> to vector<4x256xf32>
    %251 = arith.mulf %248, %250 : vector<4x256xf32>
    %c48_i32_33 = arith.constant 48 : i32
    %252 = tpu.dynamic_rotate %244 by %c48_i32_33 dim 1 : vector<4x256xf32>, i32 -> vector<4x256xf32>
    %253 = vector.extract_strided_slice %2 {offsets = [1, 0], sizes = [1, 256], strides = [1, 1]} : vector<9x256xf32> to vector<1x256xf32>
    %254 = vector.broadcast %253 : vector<1x256xf32> to vector<4x256xf32>
    %255 = arith.mulf %252, %254 : vector<4x256xf32>
    %256 = vector.extract_strided_slice %187 {offsets = [0, 1], sizes = [4, 1], strides = [1, 1]} : vector<4x9xf32> to vector<4x1xf32>
    %257 = vector.broadcast %256 : vector<4x1xf32> to vector<4x256xf32>
    %258 = arith.mulf %255, %257 : vector<4x256xf32>
    %c45_i32_34 = arith.constant 45 : i32
    %259 = tpu.dynamic_rotate %244 by %c45_i32_34 dim 1 : vector<4x256xf32>, i32 -> vector<4x256xf32>
    %260 = vector.extract_strided_slice %2 {offsets = [2, 0], sizes = [1, 256], strides = [1, 1]} : vector<9x256xf32> to vector<1x256xf32>
    %261 = vector.broadcast %260 : vector<1x256xf32> to vector<4x256xf32>
    %262 = arith.mulf %259, %261 : vector<4x256xf32>
    %263 = vector.extract_strided_slice %187 {offsets = [0, 2], sizes = [4, 1], strides = [1, 1]} : vector<4x9xf32> to vector<4x1xf32>
    %264 = vector.broadcast %263 : vector<4x1xf32> to vector<4x256xf32>
    %265 = arith.mulf %262, %264 : vector<4x256xf32>
    %c3_i32_35 = arith.constant 3 : i32
    %266 = tpu.dynamic_rotate %244 by %c3_i32_35 dim 1 : vector<4x256xf32>, i32 -> vector<4x256xf32>
    %267 = vector.extract_strided_slice %2 {offsets = [3, 0], sizes = [1, 256], strides = [1, 1]} : vector<9x256xf32> to vector<1x256xf32>
    %268 = vector.broadcast %267 : vector<1x256xf32> to vector<4x256xf32>
    %269 = arith.mulf %266, %268 : vector<4x256xf32>
    %270 = vector.extract_strided_slice %187 {offsets = [0, 3], sizes = [4, 1], strides = [1, 1]} : vector<4x9xf32> to vector<4x1xf32>
    %271 = vector.broadcast %270 : vector<4x1xf32> to vector<4x256xf32>
    %272 = arith.mulf %269, %271 : vector<4x256xf32>
    %273 = vector.extract_strided_slice %2 {offsets = [4, 0], sizes = [1, 256], strides = [1, 1]} : vector<9x256xf32> to vector<1x256xf32>
    %274 = vector.broadcast %273 : vector<1x256xf32> to vector<4x256xf32>
    %275 = arith.mulf %244, %274 : vector<4x256xf32>
    %276 = vector.extract_strided_slice %187 {offsets = [0, 4], sizes = [4, 1], strides = [1, 1]} : vector<4x9xf32> to vector<4x1xf32>
    %277 = vector.broadcast %276 : vector<4x1xf32> to vector<4x256xf32>
    %278 = arith.mulf %275, %277 : vector<4x256xf32>
    %c253_i32_36 = arith.constant 253 : i32
    %279 = tpu.dynamic_rotate %244 by %c253_i32_36 dim 1 : vector<4x256xf32>, i32 -> vector<4x256xf32>
    %280 = vector.extract_strided_slice %2 {offsets = [5, 0], sizes = [1, 256], strides = [1, 1]} : vector<9x256xf32> to vector<1x256xf32>
    %281 = vector.broadcast %280 : vector<1x256xf32> to vector<4x256xf32>
    %282 = arith.mulf %279, %281 : vector<4x256xf32>
    %283 = vector.extract_strided_slice %187 {offsets = [0, 5], sizes = [4, 1], strides = [1, 1]} : vector<4x9xf32> to vector<4x1xf32>
    %284 = vector.broadcast %283 : vector<4x1xf32> to vector<4x256xf32>
    %285 = arith.mulf %282, %284 : vector<4x256xf32>
    %c211_i32_37 = arith.constant 211 : i32
    %286 = tpu.dynamic_rotate %244 by %c211_i32_37 dim 1 : vector<4x256xf32>, i32 -> vector<4x256xf32>
    %287 = vector.extract_strided_slice %2 {offsets = [6, 0], sizes = [1, 256], strides = [1, 1]} : vector<9x256xf32> to vector<1x256xf32>
    %288 = vector.broadcast %287 : vector<1x256xf32> to vector<4x256xf32>
    %289 = arith.mulf %286, %288 : vector<4x256xf32>
    %290 = vector.extract_strided_slice %187 {offsets = [0, 6], sizes = [4, 1], strides = [1, 1]} : vector<4x9xf32> to vector<4x1xf32>
    %291 = vector.broadcast %290 : vector<4x1xf32> to vector<4x256xf32>
    %292 = arith.mulf %289, %291 : vector<4x256xf32>
    %c208_i32_38 = arith.constant 208 : i32
    %293 = tpu.dynamic_rotate %244 by %c208_i32_38 dim 1 : vector<4x256xf32>, i32 -> vector<4x256xf32>
    %294 = vector.extract_strided_slice %2 {offsets = [7, 0], sizes = [1, 256], strides = [1, 1]} : vector<9x256xf32> to vector<1x256xf32>
    %295 = vector.broadcast %294 : vector<1x256xf32> to vector<4x256xf32>
    %296 = arith.mulf %293, %295 : vector<4x256xf32>
    %297 = vector.extract_strided_slice %187 {offsets = [0, 7], sizes = [4, 1], strides = [1, 1]} : vector<4x9xf32> to vector<4x1xf32>
    %298 = vector.broadcast %297 : vector<4x1xf32> to vector<4x256xf32>
    %299 = arith.mulf %296, %298 : vector<4x256xf32>
    %c205_i32_39 = arith.constant 205 : i32
    %300 = tpu.dynamic_rotate %244 by %c205_i32_39 dim 1 : vector<4x256xf32>, i32 -> vector<4x256xf32>
    %301 = vector.extract_strided_slice %2 {offsets = [8, 0], sizes = [1, 256], strides = [1, 1]} : vector<9x256xf32> to vector<1x256xf32>
    %302 = vector.broadcast %301 : vector<1x256xf32> to vector<4x256xf32>
    %303 = arith.mulf %300, %302 : vector<4x256xf32>
    %304 = vector.extract_strided_slice %187 {offsets = [0, 8], sizes = [4, 1], strides = [1, 1]} : vector<4x9xf32> to vector<4x1xf32>
    %305 = vector.broadcast %304 : vector<4x1xf32> to vector<4x256xf32>
    %306 = arith.mulf %303, %305 : vector<4x256xf32>
    %307 = arith.addf %251, %258 : vector<4x256xf32>
    %308 = arith.addf %265, %272 : vector<4x256xf32>
    %309 = arith.addf %278, %285 : vector<4x256xf32>
    %310 = arith.addf %292, %299 : vector<4x256xf32>
    %311 = arith.addf %307, %308 : vector<4x256xf32>
    %312 = arith.addf %309, %310 : vector<4x256xf32>
    %313 = arith.addf %311, %312 : vector<4x256xf32>
    %314 = arith.addf %313, %306 : vector<4x256xf32>
    %315 = vector.extract_strided_slice %189 {offsets = [0, 2], sizes = [4, 1], strides = [1, 1]} : vector<8x7xf32> to vector<4x1xf32>
    %316 = vector.broadcast %315 : vector<4x1xf32> to vector<4x256xf32>
    %317 = arith.mulf %314, %316 : vector<4x256xf32>
    %318 = vector.extract_strided_slice %189 {offsets = [0, 3], sizes = [4, 1], strides = [1, 1]} : vector<8x7xf32> to vector<4x1xf32>
    %319 = vector.broadcast %318 : vector<4x1xf32> to vector<4x256xf32>
    %320 = arith.addf %317, %319 : vector<4x256xf32>
    %cst_40 = arith.constant 0.000000e+00 : f32
    %321 = vector.broadcast %cst_40 : f32 to vector<4x256xf32>
    %322 = arith.maximumf %320, %321 : vector<4x256xf32>
    %cst_41 = arith.constant dense<0.000000e+00> : vector<4xf32>
    %323 = vector.multi_reduction <add>, %322, %cst_41 [1] : vector<4x256xf32> to vector<4xf32>
    %324 = vector.shape_cast %323 : vector<4xf32> to vector<4x1xf32>
    %cst_42 = arith.constant 2.560000e+02 : f32
    %325 = vector.broadcast %cst_42 : f32 to vector<4x1xf32>
    %326 = arith.divf %324, %325 : vector<4x1xf32>
    %327 = vector.extract_strided_slice %188 {offsets = [0, 0], sizes = [4, 1], strides = [1, 1]} : vector<4x4xf32> to vector<4x1xf32>
    %328 = vector.extract_strided_slice %322 {offsets = [0, 0], sizes = [1, 256], strides = [1, 1]} : vector<4x256xf32> to vector<1x256xf32>
    %329 = vector.broadcast %327 : vector<4x1xf32> to vector<4x256xf32>
    %330 = vector.broadcast %328 : vector<1x256xf32> to vector<4x256xf32>
    %331 = arith.mulf %329, %330 : vector<4x256xf32>
    %332 = vector.extract_strided_slice %188 {offsets = [0, 1], sizes = [4, 1], strides = [1, 1]} : vector<4x4xf32> to vector<4x1xf32>
    %333 = vector.extract_strided_slice %322 {offsets = [1, 0], sizes = [1, 256], strides = [1, 1]} : vector<4x256xf32> to vector<1x256xf32>
    %334 = vector.broadcast %332 : vector<4x1xf32> to vector<4x256xf32>
    %335 = vector.broadcast %333 : vector<1x256xf32> to vector<4x256xf32>
    %336 = arith.mulf %334, %335 : vector<4x256xf32>
    %337 = vector.extract_strided_slice %188 {offsets = [0, 2], sizes = [4, 1], strides = [1, 1]} : vector<4x4xf32> to vector<4x1xf32>
    %338 = vector.extract_strided_slice %322 {offsets = [2, 0], sizes = [1, 256], strides = [1, 1]} : vector<4x256xf32> to vector<1x256xf32>
    %339 = vector.broadcast %337 : vector<4x1xf32> to vector<4x256xf32>
    %340 = vector.broadcast %338 : vector<1x256xf32> to vector<4x256xf32>
    %341 = arith.mulf %339, %340 : vector<4x256xf32>
    %342 = vector.extract_strided_slice %188 {offsets = [0, 3], sizes = [4, 1], strides = [1, 1]} : vector<4x4xf32> to vector<4x1xf32>
    %343 = vector.extract_strided_slice %322 {offsets = [3, 0], sizes = [1, 256], strides = [1, 1]} : vector<4x256xf32> to vector<1x256xf32>
    %344 = vector.broadcast %342 : vector<4x1xf32> to vector<4x256xf32>
    %345 = vector.broadcast %343 : vector<1x256xf32> to vector<4x256xf32>
    %346 = arith.mulf %344, %345 : vector<4x256xf32>
    %347 = arith.addf %331, %336 : vector<4x256xf32>
    %348 = arith.addf %341, %346 : vector<4x256xf32>
    %349 = arith.addf %347, %348 : vector<4x256xf32>
    %350 = vector.extract_strided_slice %189 {offsets = [0, 4], sizes = [4, 1], strides = [1, 1]} : vector<8x7xf32> to vector<4x1xf32>
    %351 = vector.broadcast %350 : vector<4x1xf32> to vector<4x256xf32>
    %352 = arith.addf %349, %351 : vector<4x256xf32>
    %353 = vector.broadcast %326 : vector<4x1xf32> to vector<4x256xf32>
    %354 = arith.subf %352, %353 : vector<4x256xf32>
    %355 = vector.broadcast %326 : vector<4x1xf32> to vector<4x256xf32>
    %356 = arith.subf %352, %355 : vector<4x256xf32>
    %357 = arith.mulf %354, %356 : vector<4x256xf32>
    %cst_43 = arith.constant dense<0.000000e+00> : vector<4xf32>
    %358 = vector.multi_reduction <add>, %357, %cst_43 [1] : vector<4x256xf32> to vector<4xf32>
    %359 = vector.shape_cast %358 : vector<4xf32> to vector<4x1xf32>
    %cst_44 = arith.constant 3.906250e-03 : f32
    %360 = vector.broadcast %cst_44 : f32 to vector<4x1xf32>
    %361 = arith.mulf %359, %360 : vector<4x1xf32>
    %cst_45 = arith.constant 2.000000e+00 : f32
    %362 = vector.broadcast %cst_45 : f32 to vector<4x1xf32>
    %363 = arith.mulf %362, %361 : vector<4x1xf32>
    %cst_46 = arith.constant 1.1920929E-7 : f32
    %364 = vector.broadcast %cst_46 : f32 to vector<4x1xf32>
    %365 = arith.addf %363, %364 : vector<4x1xf32>
    %366 = tpu.reciprocal %365 {approx = true} : vector<4x1xf32> -> vector<4x1xf32>
    %367 = vector.broadcast %366 : vector<4x1xf32> to vector<4x256xf32>
    %368 = arith.mulf %357, %367 : vector<4x256xf32>
    %cst_47 = arith.constant 5.000000e-01 : f32
    %369 = vector.broadcast %cst_47 : f32 to vector<4x256xf32>
    %370 = arith.addf %368, %369 : vector<4x256xf32>
    %371 = arith.negf %370 : vector<4x256xf32>
    %372 = math.exp %371 : vector<4x256xf32>
    %cst_48 = arith.constant 1.000000e+00 : f32
    %373 = vector.broadcast %cst_48 : f32 to vector<4x256xf32>
    %374 = arith.addf %373, %372 : vector<4x256xf32>
    %375 = arith.divf %373, %374 : vector<4x256xf32>
    %376 = arith.mulf %322, %375 : vector<4x256xf32>
    %377 = vector.extract_strided_slice %189 {offsets = [0, 5], sizes = [4, 1], strides = [1, 1]} : vector<8x7xf32> to vector<4x1xf32>
    %378 = vector.broadcast %377 : vector<4x1xf32> to vector<4x256xf32>
    %379 = arith.mulf %244, %378 : vector<4x256xf32>
    %380 = vector.extract_strided_slice %189 {offsets = [0, 6], sizes = [4, 1], strides = [1, 1]} : vector<8x7xf32> to vector<4x1xf32>
    %381 = vector.broadcast %380 : vector<4x1xf32> to vector<4x256xf32>
    %382 = arith.addf %379, %381 : vector<4x256xf32>
    %cst_49 = arith.constant 0.000000e+00 : f32
    %383 = vector.broadcast %cst_49 : f32 to vector<4x256xf32>
    %384 = arith.maximumf %382, %383 : vector<4x256xf32>
    %385 = vector.extract_strided_slice %189 {offsets = [4, 5], sizes = [4, 1], strides = [1, 1]} : vector<8x7xf32> to vector<4x1xf32>
    %386 = vector.broadcast %385 : vector<4x1xf32> to vector<4x256xf32>
    %387 = arith.mulf %376, %386 : vector<4x256xf32>
    %388 = vector.extract_strided_slice %189 {offsets = [4, 6], sizes = [4, 1], strides = [1, 1]} : vector<8x7xf32> to vector<4x1xf32>
    %389 = vector.broadcast %388 : vector<4x1xf32> to vector<4x256xf32>
    %390 = arith.addf %387, %389 : vector<4x256xf32>
    %cst_50 = arith.constant 0.000000e+00 : f32
    %391 = vector.broadcast %cst_50 : f32 to vector<4x256xf32>
    %392 = arith.maximumf %390, %391 : vector<4x256xf32>
    %c0_51 = arith.constant 0 : index
    %c0_52 = arith.constant 0 : index
    %c0_53 = arith.constant 0 : index
    %393 = vector.load %arg11[%c0_51, %c0_52, %c0_53] : memref<1x8x256xf32, #tpu.memory_space<vmem>>, vector<1x4x256xf32>
    %394 = vector.shape_cast %393 : vector<1x4x256xf32> to vector<4x256xf32>
    %395 = vector.shape_cast %384 : vector<4x256xf32> to vector<1x4x256xf32>
    tpu.vector_store %arg11[%c0_51, %c0_52, %c0_53], %395 {strides = array<i32>} : memref<1x8x256xf32, #tpu.memory_space<vmem>>, vector<1x4x256xf32>,
    %c0_54 = arith.constant 0 : index
    %c4 = arith.constant 4 : index
    %c0_55 = arith.constant 0 : index
    %396 = vector.load %arg11[%c0_54, %c4, %c0_55] : memref<1x8x256xf32, #tpu.memory_space<vmem>>, vector<1x4x256xf32>
    %397 = vector.shape_cast %396 : vector<1x4x256xf32> to vector<4x256xf32>
    %398 = vector.shape_cast %392 : vector<4x256xf32> to vector<1x4x256xf32>
    tpu.vector_store %arg11[%c0_54, %c4, %c0_55], %398 {strides = array<i32>} : memref<1x8x256xf32, #tpu.memory_space<vmem>>, vector<1x4x256xf32>,
    return
  }
  func.func @transform_0(%arg0: i32) -> (i32, i32, i32) {
    %c0_i32 = arith.constant 0 : i32
    %c0_i32_0 = arith.constant 0 : i32
    %c0_i32_1 = arith.constant 0 : i32
    return %arg0, %c0_i32, %c0_i32_0 : i32, i32, i32
  }
  func.func @transform_1(%arg0: i32) -> (i32, i32) {
    %c0_i32 = arith.constant 0 : i32
    %c0_i32_0 = arith.constant 0 : i32
    %c0_i32_1 = arith.constant 0 : i32
    return %c0_i32, %c0_i32_0 : i32, i32
  }
  func.func @transform_2(%arg0: i32) -> (i32, i32) {
    %c0_i32 = arith.constant 0 : i32
    %c0_i32_0 = arith.constant 0 : i32
    %c0_i32_1 = arith.constant 0 : i32
    return %c0_i32, %c0_i32_0 : i32, i32
  }
  func.func @transform_3(%arg0: i32) -> (i32, i32) {
    %c0_i32 = arith.constant 0 : i32
    %c0_i32_0 = arith.constant 0 : i32
    %c0_i32_1 = arith.constant 0 : i32
    return %c0_i32, %c0_i32_0 : i32, i32
  }
  func.func @transform_4(%arg0: i32) -> (i32, i32) {
    %c0_i32 = arith.constant 0 : i32
    %c0_i32_0 = arith.constant 0 : i32
    %c0_i32_1 = arith.constant 0 : i32
    return %c0_i32, %c0_i32_0 : i32, i32
  }
  func.func @transform_5(%arg0: i32) -> (i32, i32) {
    %c0_i32 = arith.constant 0 : i32
    %c0_i32_0 = arith.constant 0 : i32
    %c0_i32_1 = arith.constant 0 : i32
    return %c0_i32, %c0_i32_0 : i32, i32
  }
  func.func @transform_6(%arg0: i32) -> (i32, i32) {
    %c0_i32 = arith.constant 0 : i32
    %c0_i32_0 = arith.constant 0 : i32
    %c0_i32_1 = arith.constant 0 : i32
    return %c0_i32, %c0_i32_0 : i32, i32
  }
  func.func @transform_7(%arg0: i32) -> (i32, i32) {
    %c0_i32 = arith.constant 0 : i32
    %c0_i32_0 = arith.constant 0 : i32
    %c0_i32_1 = arith.constant 0 : i32
    return %c0_i32, %c0_i32_0 : i32, i32
  }
  func.func @transform_8(%arg0: i32) -> (i32, i32) {
    %c0_i32 = arith.constant 0 : i32
    %c0_i32_0 = arith.constant 0 : i32
    %c0_i32_1 = arith.constant 0 : i32
    return %c0_i32, %c0_i32_0 : i32, i32
  }
  func.func @transform_9(%arg0: i32) -> (i32, i32) {
    %c0_i32 = arith.constant 0 : i32
    %c0_i32_0 = arith.constant 0 : i32
    %c0_i32_1 = arith.constant 0 : i32
    return %c0_i32, %c0_i32_0 : i32, i32
  }
  func.func @transform_10(%arg0: i32) -> (i32, i32, i32) {
    %c0_i32 = arith.constant 0 : i32
    %c0_i32_0 = arith.constant 0 : i32
    %c0_i32_1 = arith.constant 0 : i32
    return %arg0, %c0_i32, %c0_i32_0 : i32, i32, i32
  }
}

</mosaic_0001>

<bundles_post_ra>
// kernel: tpu_custom_call.1
= control target key start
LH: loop header
LB: loop body
LE: loop exit
PB: predicated region body
PF: predicated region fallthrough
CT: control target
= control target key end

     0   :  { %s2774_s0 = inlined_call_operand.hbm [shape: f32[2,4,256], index: 0, kind: input, shape index: {}]   ;;  %s2775_s1 = inlined_call_operand.hbm [shape: f32[9,256], index: 1, kind: input, shape index: {}]   ;;  %s2776_s2 = inlined_call_operand.hbm [shape: f32[4,4], index: 2, kind: input, shape index: {}]   ;;  %s2777_s3 = inlined_call_operand.hbm [shape: f32[4,9], index: 3, kind: input, shape index: {}]   ;;  %s2778_s4 = inlined_call_operand.hbm [shape: f32[4,4], index: 4, kind: input, shape index: {}]   ;;  %s2779_s5 = inlined_call_operand.vmem [shape: f32[8,7], index: 5, kind: input, shape index: {}]   ;;  %s2780_s6 = inlined_call_operand.vmem [shape: f32[4,8], index: 6, kind: input, shape index: {}]   ;;  %s2781_s7 = inlined_call_operand.vmem [shape: f32[4,9], index: 7, kind: input, shape index: {}]   ;;  %s2782_s8 = inlined_call_operand.vmem [shape: f32[4,4], index: 8, kind: input, shape index: {}]   ;;  %s2783_s9 = inlined_call_operand.vmem [shape: f32[8,7], index: 9, kind: input, shape index: {}]   ;;  %s2784_s10 = inlined_call_operand.hbm [shape: f32[2,8,256], index: 10, kind: output, shape index: {}]  }
   0x1   :  { %2812 = sst [smem:[#allocation22_spill]] %s2775_s1 }
   0x2   :  { %2813 = sst [smem:[#allocation23_spill]] %s2782_s8 }
   0x3   :  { %2814 = sst [smem:[#allocation24_spill]] %s2784_s10 }
   0x4   :  { %15 = vsyncpa [#allocation3], 0 }
   0x5   :  { %17 = vsyncpa [#allocation3 + $0x1], 0 }
   0x6   :  { %18 = vsyncpa [#allocation6], 0 }
   0x7   :  { %19 = vsyncpa [#allocation9], 0 }
   0x8   :  { %20 = vsyncpa [#allocation4], 0 }
   0x9   :  { %22 = vsyncpa [#allocation4 + $0x1], 0  ;;  %s1984_s13 = smov 0   ;;  %s1986_s14 = smov 0  }
   0xa   :  { %s1988_s15 = smov 0   ;;  %s1990_s16 = smov 0  }
   0xb LB: > { %s1904_s17 = smov [#allocation5]   ;;  %s2005_s19 = sadd.s32 4294967295, %s1902_s16   ;;  %s1902_s16 = sphi %s1990_s16, %s2859_s16   ;;  %s1898_s15 = sphi %s1988_s15, %s2858_s15   ;;  %s1894_s14 = sphi %s1986_s14, %s2857_s14   ;;  %s1890_s13 = sphi %s1984_s13, %s2856_s13  }
   0xc   : > { %s286_s18 = sshll.u32 %s1904_s17, 4  ;;  %p1482_p0 = scmp.ge.s32.totalorder %s1902_s16, 1  ;;  %s2010_s18 = int_to_ptr.vmem [resolvable:$true] %s286_s18 }
   0xd   : > { %p2786_p1 = scmp.eq.s32.totalorder %s2005_s19, 0  ;;  %p274_p2 = scmp.lt.s32.totalorder %s1902_s16, 3 }
   0xe   : > { %s1905_s21 = smov [#allocation8]   ;;  %s1906_s24 = smov [#allocation7]  }
   0xf   : > { %p2012_p3 = pnand %p1482_p0, %p274_p2  ;;  %s311_s22 = sshll.u32 %s1905_s21, 4  ;;  %s2025_s22 = int_to_ptr.vmem [resolvable:$true] %s311_s22 }
  0x10   : > { %s300_s25 = sshll.u32 %s1906_s24, 4  ;;  %s2817_s1 = sld [smem:[#allocation22_spill]]  ;;  %s2027_s25 = int_to_ptr.vmem [resolvable:$true] %s300_s25 }
  0x11   : > { %s2815_s20 = scalar_select %p2012_p3, 1, 0 }
  0x12   : > { %p1531_p5 = pneg %p2012_p3 }
  0x14   : > { %p2021_p6 = pnand %p1531_p5, %p2786_p1 }
  0x16   : > { %s1686_s28 = scalar_lea.hbm %s2817_s1, 512  ;;  %p2037_p8 = pneg %p2021_p6 }
  0x17   : > { %p1687_p7 = scmp.ne.s32.totalorder %s2817_s1, %s1686_s28  ;;  %p1693_p11 = scmp.lt.u32.totalorder %s1686_s28, %s2817_s1 }
  0x19   : > { %p1689_p9 = pnand %p2037_p8, %p1687_p7 }
  0x1b   : > { %p1690_p10 = pneg %p1689_p9 }
  0x1d   : > { %p1695_p12 = pnand %p1693_p11, %p1690_p10 }
  0x1f   : > { %1698 = shalt.err (!%p1695_p12)
}
  0x20   : > { %s1699_s21 = scalar_lea.vmem %s2010_s18, 512  ;;  %p1707_p5 = scmp.lt.s32.totalorder %s2010_s18, %s2010_s18 }
  0x21   : > { %p1700_p13 = scmp.ne.s32.totalorder %s2010_s18, %s1699_s21  ;;  %p1708_p4 = scmp.lt.s32.totalorder %s1699_s21, %s1699_s21 }
  0x23   : > { %p1702_p0 = pnand %p1700_p13, %p2037_p8  ;;  %p1709_p7 = por %p1708_p4, %p1707_p5 }
  0x25   : > { %p1703_p2 = pneg %p1702_p0 }
  0x27   : > { %p1710_p9 = pnand %p1709_p7, %p1703_p2 }
  0x29   : > { %1713 = shalt.err (!%p1710_p9)
}
  0x2a   : > { %s1907_s24 = smov 256   ;;  %s1908_s26 = smov 16  }
  0x2b   : > { %1534 = dma.hbm_to_vmem [thread:$0]  (!%p2021_p6), %s2817_s1, 512, %s2010_s18, [#allocation6], %s1907_s24, %s1907_s24, %s1908_s26  }
  0x2c   : > { %s1714_s12 = scalar_lea.hbm %s2777_s3, 64 }
  0x2d   : > { %p1715_p4 = scmp.ne.s32.totalorder %s2777_s3, %s1714_s12  ;;  %p1721_p12 = scmp.lt.u32.totalorder %s1714_s12, %s2777_s3 }
  0x2f   : > { %p1717_p10 = pnand %p1715_p4, %p2037_p8 }
  0x31   : > { %p1718_p11 = pneg %p1717_p10 }
  0x33   : > { %p1723_p13 = pnand %p1721_p12, %p1718_p11 }
  0x35   : > { %1726 = shalt.err (!%p1723_p13)
}
  0x36   : > { %s1727_s18 = scalar_lea.vmem %s2025_s22, 64  ;;  %p1735_p7 = scmp.lt.s32.totalorder %s2025_s22, %s2025_s22 }
  0x37   : > { %p1728_p0 = scmp.ne.s32.totalorder %s2025_s22, %s1727_s18  ;;  %p1736_p9 = scmp.lt.s32.totalorder %s1727_s18, %s1727_s18 }
  0x39   : > { %p1730_p2 = pnand %p1728_p0, %p2037_p8  ;;  %p1737_p4 = por %p1736_p9, %p1735_p7 }
  0x3b   : > { %p1731_p5 = pneg %p1730_p2 }
  0x3d   : > { %p1738_p10 = pnand %p1737_p4, %p1731_p5 }
  0x3f   : > { %1741 = shalt.err (!%p1738_p10)
}
  0x40   : > { %1540 = dma.hbm_to_vmem [thread:$0]  (!%p2021_p6), %s2777_s3, 64, %s2025_s22, [#allocation9]  }
  0x41   : > { %s1742_s27 = scalar_lea.hbm %s2776_s2, 64 }
  0x42   : > { %p1743_p11 = scmp.ne.s32.totalorder %s2776_s2, %s1742_s27  ;;  %p1749_p0 = scmp.lt.u32.totalorder %s1742_s27, %s2776_s2 }
  0x44   : > { %p1745_p12 = pnand %p1743_p11, %p2037_p8 }
  0x46   : > { %p1746_p13 = pneg %p1745_p12 }
  0x48   : > { %p1751_p2 = pnand %p1749_p0, %p1746_p13 }
  0x4a   : > { %1754 = shalt.err (!%p1751_p2)
}
  0x4b   : > { %s1755_s22 = scalar_lea.vmem %s2027_s25, 64  ;;  %p1763_p4 = scmp.lt.s32.totalorder %s2027_s25, %s2027_s25 }
  0x4c   : > { %p1756_p5 = scmp.ne.s32.totalorder %s2027_s25, %s1755_s22  ;;  %p1764_p10 = scmp.lt.s32.totalorder %s1755_s22, %s1755_s22 }
  0x4e   : > { %p1758_p7 = pnand %p1756_p5, %p2037_p8  ;;  %p1765_p11 = por %p1764_p10, %p1763_p4 }
  0x50   : > { %p1759_p9 = pneg %p1758_p7 }
  0x52   : > { %p1766_p12 = pnand %p1765_p11, %p1759_p9 }
  0x54   : > { %1769 = shalt.err (!%p1766_p12)
}
  0x55   : > { %1537 = dma.hbm_to_vmem [thread:$0]  (!%p2021_p6), %s2776_s2, 64, %s2027_s25, [#allocation6]  }
  0x56   : > { %s1909_s18 = smov [#allocation10]   ;;  %s1770_s26 = scalar_lea.hbm %s2778_s4, 64 }
  0x57   : > { %s322_s8 = sshll.u32 %s1909_s18, 4  ;;  %p1771_p13 = scmp.ne.s32.totalorder %s2778_s4, %s1770_s26  ;;  %s323_s8 = int_to_ptr.vmem [resolvable:$true] %s322_s8 }
  0x58   : > { %p1777_p5 = scmp.lt.u32.totalorder %s1770_s26, %s2778_s4 }
  0x59   : > { %p1773_p0 = pnand %p1771_p13, %p2037_p8 }
  0x5b   : > { %p1774_p2 = pneg %p1773_p0 }
  0x5d   : > { %p1779_p7 = pnand %p1777_p5, %p1774_p2 }
  0x5f   : > { %1782 = shalt.err (!%p1779_p7)
}
  0x60   : > { %s1783_s25 = scalar_lea.vmem %s323_s8, 64  ;;  %p1791_p11 = scmp.lt.s32.totalorder %s323_s8, %s323_s8 }
  0x61   : > { %p1784_p9 = scmp.ne.s32.totalorder %s323_s8, %s1783_s25  ;;  %p1792_p12 = scmp.lt.s32.totalorder %s1783_s25, %s1783_s25 }
  0x63   : > { %p1786_p4 = pnand %p1784_p9, %p2037_p8  ;;  %p1793_p1 = por %p1792_p12, %p1791_p11 }
  0x65   : > { %p1787_p10 = pneg %p1786_p4 }
  0x67   : > { %p1794_p3 = pnand %p1793_p1, %p1787_p10 }
  0x69   : > { %1797 = shalt.err (!%p1794_p3)
}
  0x6a   : > { %1543 = dma.hbm_to_vmem [thread:$0]  (!%p2021_p6), %s2778_s4, 64, %s323_s8, [#allocation9]  }
  0x6b   : > { %s1481_s11 = sadd.s32 4294967294, %s1902_s16   ;;  %s2124_s23 = sadd.s32 1, %s1902_s16  }
  0x6c   : > { %s32_s17 = ssub.s32 %s1902_s16, %s2124_s23  ;;  %s35_s21 = sadd.s32 1, %s1898_s15 }
  0x6d   : > { %p33_p1 = scmp.eq.s32.totalorder %s32_s17, 0  ;;  %p42_p3 = scmp.ne.s32.totalorder %s1898_s15, %s1894_s14 }
  0x6e   : > { %p43_p8 = scmp.eq.s32.totalorder %s1902_s16, 0  ;;  %p48_p13 = scmp.ne.s32.totalorder %s1894_s14, %s1890_s13 }
  0x6f   : > { %s2135_s18 = scalar_select %p33_p1, %s1898_s15, %s35_s21  }
  0x70   : > { %p2137_p0 = por %p43_p8, %p42_p3  ;;  %p2820_p2 = scmp.eq.s32.totalorder %s2005_s19, 0 }
  0x71   : > { %p261_p5 = scmp.eq.s32.totalorder %s2005_s19, 1  ;;  %p267_p7 = scmp.eq.s32.totalorder %s1481_s11, 1 }
  0x72   : > { %p2143_p6 = por %p2820_p2, %p48_p13  ;;  %p1556_p9 = scmp.lt.s32.totalorder %s1902_s16, 2 }
  0x73   : > { %s348_s24 = sand.u32 1, %s1898_s15   ;;  %p2150_p4 = por %p261_p5, %p42_p3 }
  0x74   : > { %p2154_p10 = por %p267_p7, %p48_p13  ;;  %s1488_s28 = sshll.u32 %s348_s24, 3 }
  0x75   : > { %s2822_s26 = scalar_select %p2150_p4, 1, 0 }
  0x76   : > { %s2823_s27 = scalar_select %p2154_p10, 1, 0 }
  0x77   : > { %s1509_s29 = sshll.u32 %s1902_s16, 7  ;;  %s352_s22 = scalar_lea.vmem [#allocation2], %s1488_s28 }
  0x78   : > { %s2162_s12 = scalar_lea.hbm %s2774_s0, %s1509_s29  ;;  %s360_s11 = sshll.u32 %s352_s22, 4  ;;  %s2164_s11 = int_to_ptr.vmem [resolvable:$true] %s360_s11 }
  0x79   : > { %p2168_p11 = pnand %p1556_p9, %p2137_p0  ;;  %s349_s21 = scalar_lea.sflag [#allocation3], %s348_s24 }
  0x7a   : > { %s1798_s1 = scalar_lea.hbm %s2162_s12, 128  ;;  %s1803_s30 = scalar_lea.hbm %s2774_s0, 256 }
  0x7b   : > { %p1799_p12 = scmp.ne.s32.totalorder %s2162_s12, %s1798_s1  ;;  %p1800_p1 = pneg %p2168_p11 }
  0x7c   : > { %p1804_p13 = scmp.lt.u32.totalorder %s2162_s12, %s2774_s0  ;;  %p1805_p0 = scmp.lt.u32.totalorder %s1803_s30, %s1798_s1 }
  0x7d   : > { %p1801_p3 = pnand %p1800_p1, %p1799_p12  ;;  %p1807_p5 = scmp.lt.u32.totalorder %s1798_s1, %s2162_s12 }
  0x7e   : > { %p1806_p2 = por %p1805_p0, %p1804_p13 }
  0x7f   : > { %p1802_p8 = pneg %p1801_p3 }
  0x80   : > { %p1808_p7 = por %p1807_p5, %p1806_p2 }
  0x82   : > { %p1809_p9 = pnand %p1808_p7, %p1802_p8 }
  0x84   : > { %1812 = shalt.err (!%p1809_p9)
}
  0x85   : > { %s1813_s24 = scalar_lea.vmem %s2164_s11, 128  ;;  %s1910_s22 = smov [#allocation2]  }
  0x86   : > { %p1814_p12 = scmp.ne.s32.totalorder %s2164_s11, %s1813_s24  ;;  %s1818_s28 = sshll.u32 %s1910_s22, 4  ;;  %s1819_s28 = int_to_ptr.vmem [resolvable:$false] %s1818_s28 }
  0x87   : > { %s1820_s29 = scalar_lea.vmem %s1819_s28, 256  ;;  %p1821_p4 = scmp.lt.s32.totalorder %s2164_s11, %s1819_s28 }
  0x88   : > { %p1816_p3 = pnand %p1814_p12, %p1800_p1  ;;  %p1822_p13 = scmp.lt.s32.totalorder %s1820_s29, %s1813_s24 }
  0x8a   : > { %p1817_p10 = pneg %p1816_p3  ;;  %p1823_p0 = por %p1822_p13, %p1821_p4 }
  0x8c   : > { %p1824_p2 = pnand %p1823_p0, %p1817_p10 }
  0x8e   : > { %1827 = shalt.err (!%p1824_p2)
}
  0x8f   : > { %1547 = dma.hbm_to_vmem [thread:$0]  (!%p2168_p11), %s2162_s12, 128, %s2164_s11, %s349_s21  }
  0x90   : > { %p2825_p8 = scmp.ne.s32.totalorder %s2815_s20, 0 }
  0x92   : > { %369 = sbr.rel (%p2825_p8) target bundleno = 1383 (0x567), region = 60 }
  0x99   : > { %s2200_s1 = sand.u32 1, %s1894_s14  }
  0x9a   : > { %s1492_s30 = sshll.u32 %s2200_s1, 3  ;;  %s372_s10 = scalar_lea.sflag [#allocation3], %s2200_s1 }
  0x9b   : > { %s2204_s25 = scalar_lea.vmem [#allocation2], %s1492_s30 }
  0x9c   : > { %1873 = dma.done.wait (%p2143_p6), %s372_s10, 128  }
  0x9d   : > { %1875 = vsyncadd (%p2143_p6), %s372_s10, 4294967168  ;;  %p2826_p4 = scmp.eq.s32.totalorder %s2005_s19, 0 }
  0x9f   : > { %1877 = dma.done.wait (%p2826_p4), [#allocation6], 576   ;;  %p2827_p10 = pmov %p2826_p4 }
  0xa0   : > { %p2828_p11 = pmov %p2826_p4 }
  0xa1   : > { %1879 = vsyncadd (%p2827_p10), [#allocation6], 4294966720 }
  0xa2   : > { %1881 = dma.done.wait (%p2828_p11), [#allocation9], 128   ;;  %p2829_p1 = pmov %p2826_p4 }
  0xa3   : > { %v2798_v0 = vmov 2   ;;  %v2800_v1 = vmov 0   ;;  %v433_v2 = vld [vmem:[#allocation7] sm:$0xf]  ;;  %v2791_v3 = vmov 3   ;;  %v2804_v4 = vmov 1  }
  0xa4   : > { %1883 = vsyncadd (%p2829_p1), [#allocation9], 4294967168  ;;  %1619 = vset.pattern.permute.xlu1 %v2798_v0  ;;  %1617 = vset.pattern.permute.xlu0 %v2800_v1  ;;  %v2225_v5 = vld [vmem:[%s2779_s5] sm:$0xff]  ;;  %v434_v6 = vld [vmem:[#allocation8] sm:$0xf]  ;;  %v2789_v7 = vmov 6   ;;  %v443_v12 = vlaneseq }
  0xa5   : > { %488 = vperm.xlu1 %1619, %v433_v2   ;;  %439 = vperm.xlu0 %1617, %v433_v2   ;;  %v2802_v8 = vmov 4   ;;  %v2796_v9 = vmov 5   ;;  %v2794_v10 = vmov 7   ;;  %v2793_v11 = vmov 8   ;;  %v428_v20 = vld [vmem:[%s2204_s25] sm:$0xff]  ;;  %s1920_s12 = smov 51  }
  0xa6   : > { %v444_v13 = vshrl.u32 %v443_v12, 7  ;;  %s1921_s11 = smov 48   ;;  %s1922_s17 = smov 45   ;;  %vm789_vm8 = vcmask 1043456  }
  0xa7   : > { %s1923_s21 = smov 3   ;;  %s1924_s24 = smov 125  }
  0xa8   : > { %v2240_v14 = vsub.s32 0, %v444_v13  ;;  %v2242_v15 = vsub.s32 2, %v444_v13  ;;  %v2244_v16 = vsub.s32 6, %v444_v13  ;;  %v2246_v17 = vsub.s32 4, %v444_v13  ;;  %s1925_s22 = smov 83   ;;  %s1926_s28 = smov 80  }
  0xa9   : > { %1620 = vset.pattern.permute.xlu1 %v2791_v3  ;;  %1618 = vset.pattern.permute.xlu0 %v2804_v4  ;;  %v2248_v18 = vsub.s32 1, %v444_v13  ;;  %v2250_v19 = vsub.s32 3, %v444_v13  ;;  %v2253_v21 = vsub.s32 7, %v444_v13  ;;  %v2255_v22 = vsub.s32 5, %v444_v13  ;;  %s1927_s29 = smov 77   ;;  %s2852_s25 = sld [smem:[#allocation24_spill]] }
  0xaa   : > { %512 = vperm.xlu1 %1620, %v433_v2   ;;  %464 = vperm.xlu0 %1618, %v433_v2   ;;  %v494_v23 = vrot.slane %v428_v20, %v2242_v15  ;;  %v498_v24 = vrot.slane %v428_v20, %v2244_v16  ;;  %v446_v25 = vrot.slane %v428_v20, %v2240_v14  ;;  %s1359_s8 = scalar_lea.sflag [#allocation4], %s2200_s1  ;;  %p2853_p5 = scmp.ne.s32.totalorder %s2822_s26, 0 }
  0xab   : > { %v450_v26 = vrot.slane %v428_v20, %v2246_v17  ;;  %v518_v27 = vrot.slane %v428_v20, %v2250_v19  ;;  %v522_v28 = vrot.slane %v428_v20, %v2253_v21  ;;  %v470_v29 = vrot.slane %v428_v20, %v2248_v18 }
  0xac   : > { %v474_v30 = vrot.slane %v428_v20, %v2255_v22  ;;  %v504_v33 = vrot.slane %v494_v23, %v2242_v15  ;;  %v508_v34 = vrot.slane %v498_v24, %v2242_v15  ;;  %v456_v35 = vrot.slane %v446_v25, %v2240_v14 }
  0xad   : > { %v460_v36 = vrot.slane %v450_v26, %v2240_v14  ;;  %v528_v37 = vrot.slane %v518_v27, %v2250_v19  ;;  %v532_v38 = vrot.slane %v522_v28, %v2250_v19  ;;  %v480_v39 = vrot.slane %v470_v29, %v2248_v18 }
  0xae   : > { %1621 = vset.pattern.permute.xlu1 %v2800_v1  ;;  %549 = vperm.xlu0 %1618, %v2225_v5   ;;  %v484_v40 = vrot.slane %v474_v30, %v2248_v18 }
  0xaf   : > { %543 = vperm.xlu1 %1621, %v2225_v5  }
  0xb2   : > { %600 = vperm.xlu0 %1618, %v434_v6  }
  0xb3   : > { %577 = vperm.xlu1 %1621, %v434_v6  }
  0xb6   : > { %1623 = vset.pattern.permute.xlu0 %v2791_v3 }
  0xb7   : > { %1622 = vset.pattern.permute.xlu1 %v2798_v0  ;;  %646 = vperm.xlu0 %1623, %v434_v6  }
  0xb8   : > { %623 = vperm.xlu1 %1622, %v434_v6  }
  0xbb   : > { %1626 = vset.pattern.permute.xlu0 %v2789_v7 }
  0xbc   : > { %1624 = vset.pattern.permute.xlu1 %v2802_v8  ;;  %708 = vperm.xlu0 %1626, %v434_v6  }
  0xbd   : > { %662 = vperm.xlu1 %1624, %v434_v6  }
  0xc0   : > { %1629 = vset.pattern.permute.xlu0 %v2798_v0 }
  0xc1   : > { %1625 = vset.pattern.permute.xlu1 %v2796_v9 }
  0xc2   : > { %685 = vperm.xlu1 %1625, %v434_v6  }
  0xc6   : > { %1627 = vset.pattern.permute.xlu1 %v2794_v10 }
  0xc7   : > { %731 = vperm.xlu1 %1627, %v434_v6  }
  0xcb   : > { %1628 = vset.pattern.permute.xlu1 %v2793_v11 }
  0xcc   : > { %754 = vperm.xlu1 %1628, %v434_v6   ;;  %v435_v6 = vld [vmem:[#allocation10] sm:$0xf] }
  0xd0   : > { %1630 = vset.pattern.permute.xlu1 %v2791_v3 }
 0x124   : > { %v489_v31 = vpop.permute.xlu1 %488  ;;  %v440_v32 = vpop.permute.xlu0 %439 }
 0x125   : > { %v509_v41 = vmul.f32 %v504_v33, %v489_v31  ;;  %v510_v42 = vmul.f32 %v508_v34, %v489_v31  ;;  %v461_v43 = vmul.f32 %v456_v35, %v440_v32  ;;  %v462_v44 = vmul.f32 %v460_v36, %v440_v32  ;;  %v429_v36 = vld [vmem:[#allocation5] sm:$0xff] }
 0x129   : > { %v513_v45 = vpop.permute.xlu1 %512  ;;  %v465_v46 = vpop.permute.xlu0 %464 }
 0x12a   : > { %v533_v47 = vmul.f32 %v528_v37, %v513_v45  ;;  %v534_v48 = vmul.f32 %v532_v38, %v513_v45  ;;  %v485_v49 = vmul.f32 %v480_v39, %v465_v46  ;;  %v486_v50 = vmul.f32 %v484_v40, %v465_v46  ;;  %v430_v37 = vld [vmem:[#allocation5 + $0x8] sm:$0xff] }
 0x12b   : > { %v2340_v38 = vand.u32 127, %v443_v12  ;;  %v2357_v46 = vrot.slane %v429_v36, %v2248_v18 }
 0x12c   : > { %v537_v51 = vadd.f32 %v533_v47, %v509_v41  ;;  %v538_v52 = vadd.f32 %v534_v48, %v510_v42  ;;  %v535_v53 = vadd.f32 %v485_v49, %v461_v43  ;;  %v536_v54 = vadd.f32 %v486_v50, %v462_v44 }
 0x12d   : > { %v550_v60 = vpop.permute.xlu0 %549  ;;  %v2343_v41 = vrot.slane %v429_v36, %v2246_v17  ;;  %v2346_v42 = vrot.slane %v430_v37, %v2246_v17  ;;  %vm562_vm0 = vcmp.lt.s32.totalorder %v2340_v38, 51  ;;  %v2350_v43 = vrot.slane %v429_v36, %v2240_v14  ;;  %2832 = vst [vmem:[#allocation18_spill] sm:$0xff] %v2357_v46 }
 0x12e   : > { %v544_v55 = vpop.permute.xlu1 %543  ;;  %v539_v56 = vadd.f32 %v537_v51, %v535_v53  ;;  %v540_v57 = vadd.f32 %v538_v52, %v536_v54  ;;  %v2353_v44 = vrot.slane %v430_v37, %v2240_v14  ;;  %vm586_vm1 = vcmp.lt.s32.totalorder %v2340_v38, 48 }
 0x12f   : > { %2830 = vst [vmem:[#allocation16_spill] sm:$0xff] %v2350_v43  ;;  %v2360_v47 = vrot.slane %v430_v37, %v2248_v18  ;;  %vm609_vm2 = vcmp.lt.s32.totalorder %v2340_v38, 45  ;;  %v2364_v17 = vrot.slane %v429_v36, %v2242_v15  ;;  %v2367_v48 = vrot.slane %v430_v37, %v2242_v15 }
 0x130   : > { %v546_v58 = vmul.f32 %v544_v55, %v539_v56  ;;  %v547_v59 = vmul.f32 %v544_v55, %v540_v57  ;;  %2831 = vst [vmem:[#allocation17_spill] sm:$0xff] %v2353_v44  ;;  %vm632_vm3 = vcmp.lt.s32.totalorder %v2340_v38, 3  ;;  %v2371_v49 = vrot.slane %v429_v36, %v2250_v19 }
 0x131   : > { %v2329_v25 = vpop.permute.xlu0 %600  ;;  %2833 = vst [vmem:[#allocation19_spill] sm:$0xff] %v2360_v47  ;;  %v2374_v50 = vrot.slane %v430_v37, %v2250_v19  ;;  %vm671_vm4 = vcmp.lt.s32.totalorder %v2340_v38, 125  ;;  %v2380_v52 = vrot.slane %v429_v36, %v2255_v22  ;;  %v2383_v53 = vrot.slane %v430_v37, %v2255_v22 }
 0x132   : > { %v552_v61 = vadd.f32 %v550_v60, %v546_v58  ;;  %v553_v62 = vadd.f32 %v550_v60, %v547_v59  ;;  %v2321_v13 = vpop.permute.xlu1 %577  ;;  %vm694_vm5 = vcmp.lt.s32.totalorder %v2340_v38, 83  ;;  %v2387_v55 = vrot.slane %v429_v36, %v2244_v16 }
 0x133   : > { %v2390_v56 = vrot.slane %v430_v37, %v2244_v16  ;;  %vm717_vm6 = vcmp.lt.s32.totalorder %v2340_v38, 80  ;;  %v2398_v22 = vrot.slane %v429_v36, %v2253_v21  ;;  %v2401_v60 = vrot.slane %v430_v37, %v2253_v21 }
 0x134   : > { %v2273_v63 = vmax.f32 %v552_v61, 0.0  ;;  %v2275_v2 = vmax.f32 %v553_v62, 0.0  ;;  %vm740_vm7 = vcmp.lt.s32.totalorder %v2340_v38, 77 }
 0x136   : > { %558 = vrot.lane.b32.xlu0 %v2275_v2, %s1920_s12  ;;  %556 = vrot.lane.b32.xlu1 %v2273_v63, %s1920_s12  ;;  %v2333_v27 = vpop.permute.xlu0 %646  ;;  %v659_v51 = vmul.f32 %v2343_v41, %v2273_v63 }
 0x137   : > { %v2323_v20 = vpop.permute.xlu1 %623 }
 0x13a   : > { %584 = vrot.lane.b32.xlu0 %v2275_v2, %s1921_s11  ;;  %582 = vrot.lane.b32.xlu1 %v2273_v63, %s1921_s11 }
 0x13b   : > { %v2337_v29 = vpop.permute.xlu0 %708 }
 0x13c   : > { %v2325_v23 = vpop.permute.xlu1 %662 }
 0x13e   : > { %607 = vrot.lane.b32.xlu0 %v2275_v2, %s1922_s17  ;;  %605 = vrot.lane.b32.xlu1 %v2273_v63, %s1922_s17 }
 0x141   : > { %v2327_v24 = vpop.permute.xlu1 %685 }
 0x142   : > { %630 = vrot.lane.b32.xlu0 %v2275_v2, %s1923_s21  ;;  %628 = vrot.lane.b32.xlu1 %v2273_v63, %s1923_s21 }
 0x146   : > { %669 = vrot.lane.b32.xlu0 %v2275_v2, %s1924_s24  ;;  %667 = vrot.lane.b32.xlu1 %v2273_v63, %s1924_s24  ;;  %v2331_v26 = vpop.permute.xlu1 %731 }
 0x14a   : > { %692 = vrot.lane.b32.xlu0 %v2275_v2, %s1925_s22  ;;  %690 = vrot.lane.b32.xlu1 %v2273_v63, %s1925_s22 }
 0x14b   : > { %v2335_v28 = vpop.permute.xlu1 %754 }
 0x14e   : > { %715 = vrot.lane.b32.xlu0 %v2275_v2, %s1926_s28  ;;  %713 = vrot.lane.b32.xlu1 %v2273_v63, %s1926_s28 }
 0x152   : > { %736 = vrot.lane.b32.xlu0 %v2273_v63, %s1927_s29  ;;  %738 = vrot.lane.b32.xlu1 %v2275_v2, %s1927_s29 }
 0x156   : > { %776 = vperm.xlu0 %1629, %v2225_v5   ;;  %782 = vperm.xlu1 %1630, %v2225_v5  }
 0x15a   : > { %1631 = vset.pattern.permute.xlu0 %v2800_v1  ;;  %1636 = vset.pattern.permute.xlu1 %v2796_v9 }
 0x15b   : > { %799 = vperm.xlu0 %1631, %v435_v6  }
 0x15f   : > { %1632 = vset.pattern.permute.xlu0 %v2804_v4 }
 0x160   : > { %813 = vperm.xlu0 %1632, %v435_v6  }
 0x164   : > { %1633 = vset.pattern.permute.xlu0 %v2798_v0 }
 0x165   : > { %827 = vperm.xlu0 %1633, %v435_v6  }
 0x169   : > { %1634 = vset.pattern.permute.xlu0 %v2791_v3 }
 0x16a   : > { %841 = vperm.xlu0 %1634, %v435_v6  }
 0x16e   : > { %1635 = vset.pattern.permute.xlu0 %v2802_v8 }
 0x16f   : > { %861 = vperm.xlu0 %1635, %v2225_v5  }
 0x173   : > { %1637 = vset.pattern.permute.xlu0 %v2789_v7 }
 0x174   : > { %904 = vperm.xlu0 %1637, %v2225_v5  }
 0x178   : > { %1638 = vset.pattern.permute.xlu0 %v2800_v1 }
 0x1a8   : > { %v559_v30 = vpop.permute.xlu0 %558  ;;  %v557_v31 = vpop.permute.xlu1 %556 }
 0x1a9   : > { %v563_v61 = vsel %vm562_vm0, %v557_v31, %v559_v30  ;;  %v564_v16 = vsel %vm562_vm0, %v559_v30, %v557_v31 }
 0x1ac   : > { %v585_v32 = vpop.permute.xlu0 %584  ;;  %v583_v33 = vpop.permute.xlu1 %582 }
 0x1ad   : > { %v588_v36 = vsel %vm586_vm1, %v585_v32, %v583_v33 }
 0x1b0   : > { %v608_v34 = vpop.permute.xlu0 %607  ;;  %v606_v35 = vpop.permute.xlu1 %605 }
 0x1b1   : > { %v610_v30 = vsel %vm609_vm2, %v606_v35, %v608_v34  ;;  %v611_v31 = vsel %vm609_vm2, %v608_v34, %v606_v35 }
 0x1b2   : > { %v620_v10 = vmul.f32 %v2364_v17, %v611_v31 }
 0x1b4   : > { %v631_v39 = vpop.permute.xlu0 %630  ;;  %v629_v40 = vpop.permute.xlu1 %628 }
 0x1b5   : > { %v633_v58 = vsel %vm632_vm3, %v629_v40, %v631_v39  ;;  %v634_v59 = vsel %vm632_vm3, %v631_v39, %v629_v40  ;;  %v587_v39 = vsel %vm586_vm1, %v583_v33, %v585_v32 }
 0x1b6   : > { %v643_v40 = vmul.f32 %v2371_v49, %v634_v59  ;;  %v660_v59 = vmul.f32 %v2346_v42, %v2275_v2  ;;  %v598_v11 = vmul.f32 %v2360_v47, %v587_v39 }
 0x1b8   : > { %v670_v12 = vpop.permute.xlu0 %669  ;;  %v668_v45 = vpop.permute.xlu1 %667 }
 0x1b9   : > { %v672_v62 = vsel %vm671_vm4, %v668_v45, %v670_v12  ;;  %v673_v6 = vsel %vm671_vm4, %v670_v12, %v668_v45  ;;  %v644_v12 = vmul.f32 %v2374_v50, %v633_v58 }
 0x1ba   : > { %v682_v32 = vmul.f32 %v2380_v52, %v672_v62  ;;  %v683_v33 = vmul.f32 %v2383_v53, %v673_v6  ;;  %v665_v62 = vmul.f32 %v2325_v23, %v659_v51  ;;  %v597_v6 = vmul.f32 %v2357_v46, %v588_v36 }
 0x1bb   : > { %v650_v51 = vmul.f32 %v2333_v27, %v644_v12 }
 0x1bc   : > { %v693_v54 = vpop.permute.xlu0 %692  ;;  %v691_v57 = vpop.permute.xlu1 %690  ;;  %v688_v36 = vmul.f32 %v2327_v24, %v682_v32  ;;  %v689_v39 = vmul.f32 %v2327_v24, %v683_v33 }
 0x1bd   : > { %v695_v21 = vsel %vm694_vm5, %v691_v57, %v693_v54  ;;  %v696_v37 = vsel %vm694_vm5, %v693_v54, %v691_v57 }
 0x1be   : > { %v705_v57 = vmul.f32 %v2387_v55, %v695_v21  ;;  %v706_v34 = vmul.f32 %v2390_v56, %v696_v37 }
 0x1c0   : > { %v716_v45 = vpop.permute.xlu0 %715  ;;  %v714_v7 = vpop.permute.xlu1 %713  ;;  %v711_v31 = vmul.f32 %v2337_v29, %v705_v57 }
 0x1c1   : > { %v718_v3 = vsel %vm717_vm6, %v714_v7, %v716_v45  ;;  %v719_v54 = vsel %vm717_vm6, %v716_v45, %v714_v7  ;;  %v621_v7 = vmul.f32 %v2367_v48, %v610_v30  ;;  %v574_v45 = vmul.f32 %v2353_v44, %v563_v61 }
 0x1c2   : > { %v728_v35 = vmul.f32 %v2398_v22, %v718_v3  ;;  %v729_v58 = vmul.f32 %v2401_v60, %v719_v54  ;;  %v573_v3 = vmul.f32 %v2350_v43, %v564_v16  ;;  %v649_v54 = vmul.f32 %v2333_v27, %v643_v40 }
 0x1c3   : > { %v712_v30 = vmul.f32 %v2337_v29, %v706_v34  ;;  %v604_v16 = vmul.f32 %v2329_v25, %v598_v11  ;;  %v626_v61 = vmul.f32 %v2323_v20, %v620_v10  ;;  %v627_v27 = vmul.f32 %v2323_v20, %v621_v7  ;;  %v2462_v11 = vld [vmem:[#allocation5 + $0x18] ss:$0 sm:$0xff] }
 0x1c4   : > { %v734_v21 = vmul.f32 %v2331_v26, %v728_v35  ;;  %v735_v37 = vmul.f32 %v2331_v26, %v729_v58  ;;  %v666_v35 = vmul.f32 %v2325_v23, %v660_v59  ;;  %v603_v26 = vmul.f32 %v2329_v25, %v597_v6  ;;  %v737_v32 = vpop.permute.xlu0 %736  ;;  %v739_v24 = vpop.permute.xlu1 %738  ;;  %v2460_v59 = vld [vmem:[#allocation5 + $0x10] ss:$0 sm:$0xff]  ;;  %2835 = vst [vmem:[#allocation21_spill] sm:$0xff] %v2462_v11 }
 0x1c5   : > { %v580_v33 = vmul.f32 %v2321_v13, %v573_v3  ;;  %v581_v29 = vmul.f32 %v2321_v13, %v574_v45  ;;  %v761_v57 = vadd.f32 %v649_v54, %v626_v61  ;;  %v762_v23 = vadd.f32 %v650_v51, %v627_v27  ;;  %2834 = vst [vmem:[#allocation20_spill] sm:$0xff] %v2460_v59 }
 0x1c6   : > { %v765_v40 = vadd.f32 %v734_v21, %v711_v31  ;;  %v766_v12 = vadd.f32 %v735_v37, %v712_v30  ;;  %v763_v34 = vadd.f32 %v688_v36, %v665_v62  ;;  %v764_v58 = vadd.f32 %v689_v39, %v666_v35 }
 0x1c7   : > { %v741_v10 = vsel %vm740_vm7, %v737_v32, %v739_v24  ;;  %v742_v20 = vsel %vm740_vm7, %v739_v24, %v737_v32  ;;  %v759_v25 = vadd.f32 %v603_v26, %v580_v33  ;;  %v760_v6 = vadd.f32 %v604_v16, %v581_v29  ;;  %v2483_v33 = vld [vmem:[%s2780_s6] sm:$0xf] }
 0x1c8   : > { %v769_v7 = vadd.f32 %v765_v40, %v763_v34  ;;  %v770_v21 = vadd.f32 %v766_v12, %v764_v58  ;;  %v751_v13 = vmul.f32 %v2460_v59, %v741_v10  ;;  %v752_v37 = vmul.f32 %v2462_v11, %v742_v20  ;;  %927 = vperm.xlu0 %1638, %v2483_v33   ;;  %v2494_v29 = vld [vmem:[%s2783_s9] sm:$0xff] }
 0x1c9   : > { %v767_v62 = vadd.f32 %v761_v57, %v759_v25  ;;  %v768_v3 = vadd.f32 %v762_v23, %v760_v6  ;;  %v2501_v57 = vld [vmem:[%s2781_s7] sm:$0xf]  ;;  %v2836_v23 = vmov 7   ;;  %v2837_v34 = vmov 8  }
 0x1ca   : > { %v757_v51 = vmul.f32 %v2335_v28, %v751_v13  ;;  %v758_v36 = vmul.f32 %v2335_v28, %v752_v37 }
 0x1cb   : > { %v771_v45 = vadd.f32 %v769_v7, %v767_v62  ;;  %v772_v54 = vadd.f32 %v770_v21, %v768_v3 }
 0x1cc   : > { %1640 = vset.pattern.permute.xlu0 %v2798_v0 }
 0x1cd   : > { %v773_v39 = vadd.f32 %v771_v45, %v757_v51  ;;  %v774_v31 = vadd.f32 %v772_v54, %v758_v36  ;;  %955 = vperm.xlu0 %1640, %v2483_v33  }
 0x1d1   : > { %1643 = vset.pattern.permute.xlu0 %v2796_v9 }
 0x1d2   : > { %997 = vperm.xlu0 %1643, %v2483_v33  }
 0x1d5   : > { %v777_v30 = vpop.permute.xlu0 %776  ;;  %v783_v35 = vpop.permute.xlu1 %782 }
 0x1d6   : > { %v779_v26 = vmul.f32 %v777_v30, %v773_v39  ;;  %v780_v16 = vmul.f32 %v777_v30, %v774_v31  ;;  %1646 = vset.pattern.permute.xlu0 %v2800_v1 }
 0x1d7   : > { %1054 = vperm.xlu0 %1646, %v2494_v29  }
 0x1d8   : > { %v785_v61 = vadd.f32 %v783_v35, %v779_v26  ;;  %v786_v27 = vadd.f32 %v783_v35, %v780_v16 }
 0x1da   : > { %v2472_v40 = vmax.f32 %v785_v61, 0.0  ;;  %v2474_v12 = vmax.f32 %v786_v27, 0.0  ;;  %v800_v58 = vpop.permute.xlu0 %799 }
 0x1db   : > { %1649 = vset.pattern.permute.xlu0 %v2804_v4 }
 0x1dc   : > { %v790_v32 = vsel %vm789_vm8, %v2472_v40, 0.0  ;;  %v791_v24 = vsel %vm789_vm8, %v2474_v12, 0.0  ;;  %1091 = vperm.xlu0 %1649, %v2501_v57   ;;  %v847_v6 = vrot.slane %v2472_v40, %v2250_v19  ;;  %v851_v7 = vrot.slane %v2474_v12, %v2250_v19 }
 0x1dd   : > { %v792_v28 = vadd.f32 %v791_v24, %v790_v32  ;;  %v805_v21 = vrot.slane %v2472_v40, %v2240_v14  ;;  %v809_v13 = vrot.slane %v2474_v12, %v2240_v14  ;;  %v819_v37 = vrot.slane %v2472_v40, %v2248_v18 }
 0x1de   : > { %v823_v62 = vrot.slane %v2474_v12, %v2248_v18  ;;  %v833_v3 = vrot.slane %v2472_v40, %v2242_v15  ;;  %v837_v45 = vrot.slane %v2474_v12, %v2242_v15 }
 0x1df   : > { %793 = vadd.xlane.f32.xlu1 %v792_v28  ;;  %v814_v10 = vpop.permute.xlu0 %813  ;;  %v810_v35 = vmul.f32 %v805_v21, %v800_v58  ;;  %v811_v26 = vmul.f32 %v809_v13, %v800_v58  ;;  %v2838_v21 = vmov 1   ;;  %v2839_v13 = vmov 3  }
 0x1e0   : > { %1652 = vset.pattern.permute.xlu0 %v2802_v8  ;;  %v824_v36 = vmul.f32 %v819_v37, %v814_v10  ;;  %v825_v39 = vmul.f32 %v823_v62, %v814_v10 }
 0x1e1   : > { %1127 = vperm.xlu0 %1652, %v2501_v57  }
 0x1e2   : > { %v854_v27 = vadd.f32 %v824_v36, %v810_v35  ;;  %v855_v32 = vadd.f32 %v825_v39, %v811_v26 }
 0x1e4   : > { %v828_v20 = vpop.permute.xlu0 %827 }
 0x1e5   : > { %1655 = vset.pattern.permute.xlu0 %v2836_v23  ;;  %v838_v31 = vmul.f32 %v833_v3, %v828_v20  ;;  %v839_v30 = vmul.f32 %v837_v45, %v828_v20 }
 0x1e6   : > { %1169 = vperm.xlu0 %1655, %v2501_v57  }
 0x1e9   : > { %v842_v25 = vpop.permute.xlu0 %841 }
 0x1ea   : > { %1656 = vset.pattern.permute.xlu0 %v2837_v34  ;;  %v852_v54 = vmul.f32 %v847_v6, %v842_v25  ;;  %v853_v51 = vmul.f32 %v851_v7, %v842_v25 }
 0x1ec   : > { %v856_v16 = vadd.f32 %v852_v54, %v838_v31  ;;  %v857_v61 = vadd.f32 %v853_v51, %v839_v30 }
 0x1ee   : > { %v858_v24 = vadd.f32 %v856_v16, %v854_v27  ;;  %v859_v28 = vadd.f32 %v857_v61, %v855_v32  ;;  %v862_v34 = vpop.permute.xlu0 %861 }
 0x1f0   : > { %v864_v0 = vadd.f32 %v862_v34, %v858_v24  ;;  %v865_v1 = vadd.f32 %v862_v34, %v859_v28 }
 0x1f3   : > { %v905_v32 = vpop.permute.xlu0 %904 }
 0x26c   : > { %v794_v9 = vpop.xlane.xlu1 %793 }
 0x26d   : > { %v796_v8 = vmul.f32 0.00390625, %v794_v9 }
 0x26f   : > { %v866_v4 = vsub.f32 %v864_v0, %v796_v8  ;;  %v867_v6 = vsub.f32 %v865_v1, %v796_v8  ;;  %v2840_v0 = vmov 4   ;;  %v2841_v1 = vmov 6  }
 0x270   : > { %v2844_v8 = vmov 5  }
 0x271   : > { %v868_v25 = vmul.f32 %v866_v4, %v866_v4  ;;  %v869_v7 = vmul.f32 %v867_v6, %v867_v6  ;;  %v2842_v4 = vmov 0  }
 0x273   : > { %v870_v10 = vsel %vm789_vm8, %v868_v25, 0.0  ;;  %v871_v20 = vsel %vm789_vm8, %v869_v7, 0.0 }
 0x274   : > { %v872_v58 = vadd.f32 %v871_v20, %v870_v10  ;;  %v928_v10 = vpop.permute.xlu0 %927 }
 0x276   : > { %873 = vadd.xlane.f32.xlu1 %v872_v58 }
 0x287   : > { %898 = vperm.xlu1 %1636, %v2225_v5   ;;  %v2843_v5 = vmov 2  }
 0x28b   : > { %1639 = vset.pattern.permute.xlu1 %v2838_v21 }
 0x28c   : > { %941 = vperm.xlu1 %1639, %v2483_v33  }
 0x290   : > { %1641 = vset.pattern.permute.xlu1 %v2839_v13 }
 0x291   : > { %969 = vperm.xlu1 %1641, %v2483_v33  }
 0x295   : > { %1642 = vset.pattern.permute.xlu1 %v2840_v0 }
 0x296   : > { %983 = vperm.xlu1 %1642, %v2483_v33  }
 0x29a   : > { %1644 = vset.pattern.permute.xlu1 %v2841_v1 }
 0x29b   : > { %1011 = vperm.xlu1 %1644, %v2483_v33  }
 0x29f   : > { %1645 = vset.pattern.permute.xlu1 %v2836_v23 }
 0x2a0   : > { %1025 = vperm.xlu1 %1645, %v2483_v33  }
 0x2a4   : > { %1647 = vset.pattern.permute.xlu1 %v2838_v21 }
 0x2a5   : > { %1060 = vperm.xlu1 %1647, %v2494_v29  }
 0x2a9   : > { %1648 = vset.pattern.permute.xlu1 %v2842_v4 }
 0x2aa   : > { %1077 = vperm.xlu1 %1648, %v2501_v57  }
 0x2ae   : > { %1650 = vset.pattern.permute.xlu1 %v2843_v5 }
 0x2af   : > { %1105 = vperm.xlu1 %1650, %v2501_v57  }
 0x2b3   : > { %1651 = vset.pattern.permute.xlu1 %v2839_v13 }
 0x2b4   : > { %1119 = vperm.xlu1 %1651, %v2501_v57  }
 0x2b8   : > { %1653 = vset.pattern.permute.xlu1 %v2844_v8 }
 0x2b9   : > { %1141 = vperm.xlu1 %1653, %v2501_v57  }
 0x2bd   : > { %1654 = vset.pattern.permute.xlu1 %v2841_v1 }
 0x2be   : > { %1155 = vperm.xlu1 %1654, %v2501_v57  }
 0x2c2   : > { %1658 = vset.pattern.permute.xlu1 %v2839_v13 }
 0x303   : > { %v874_v9 = vpop.xlane.xlu1 %873 }
 0x304   : > { %v875_v33 = vmul.f32 0.00390625, %v874_v9 }
 0x306   : > { %v876_v23 = vmul.f32 2.0, %v875_v33 }
 0x307   : > { %v899_v31 = vpop.permute.xlu1 %898 }
 0x308   : > { %v877_v37 = vadd.f32 1.1920929e-07, %v876_v23  ;;  %v901_v30 = vmul.f32 %v899_v31, %v2273_v63  ;;  %v902_v35 = vmul.f32 %v899_v31, %v2275_v2 }
 0x30a   : > { %1666 = vrcp.f32 %v877_v37  ;;  %v907_v28 = vadd.f32 %v905_v32, %v901_v30  ;;  %v908_v34 = vadd.f32 %v905_v32, %v902_v35  ;;  %v956_v37 = vpop.permute.xlu0 %955 }
 0x30b   : > { %v942_v26 = vpop.permute.xlu1 %941 }
 0x310   : > { %v970_v6 = vpop.permute.xlu1 %969 }
 0x314   : > { %v1667_v62 = vpop.eup %1666 }
 0x315   : > { %v879_v3 = vmul.f32 %v1667_v62, %v868_v25  ;;  %v880_v45 = vmul.f32 %v1667_v62, %v869_v7  ;;  %v909_v25 = vmax.f32 %v907_v28, 0.0  ;;  %v910_v7 = vmax.f32 %v908_v34, 0.0  ;;  %v984_v20 = vpop.permute.xlu1 %983 }
 0x317   : > { %v881_v54 = vadd.f32 0.5, %v879_v3  ;;  %v882_v51 = vadd.f32 0.5, %v880_v45  ;;  %v933_v58 = vrot.slane %v909_v25, %v2240_v14  ;;  %v937_v63 = vrot.slane %v910_v7, %v2240_v14 }
 0x318   : > { %v947_v2 = vrot.slane %v909_v25, %v2248_v18  ;;  %v951_v9 = vrot.slane %v910_v7, %v2248_v18  ;;  %v961_v33 = vrot.slane %v909_v25, %v2242_v15  ;;  %v965_v62 = vrot.slane %v910_v7, %v2242_v15 }
 0x319   : > { %v1500_v36 = vmul.f32 -1.442695, %v881_v54  ;;  %v1501_v39 = vmul.f32 -1.442695, %v882_v51  ;;  %v975_v3 = vrot.slane %v909_v25, %v2250_v19  ;;  %v979_v45 = vrot.slane %v910_v7, %v2250_v19 }
 0x31a   : > { %v938_v35 = vmul.f32 %v933_v58, %v928_v10  ;;  %v953_v28 = vmul.f32 %v951_v9, %v942_v26  ;;  %v966_v34 = vmul.f32 %v961_v33, %v956_v37  ;;  %v967_v59 = vmul.f32 %v965_v62, %v956_v37 }
 0x31b   : > { %1668 = vpow2.f32 %v1500_v36  ;;  %v911_v36 = vrot.slane %v899_v31, 4  ;;  %v980_v44 = vmul.f32 %v975_v3, %v970_v6  ;;  %v981_v25 = vmul.f32 %v979_v45, %v970_v6 }
 0x31c   : > { %1670 = vpow2.f32 %v1501_v39  ;;  %v915_v39 = vrot.slane %v905_v32, 4 }
 0x31d   : > { %v1040_v32 = vadd.f32 %v980_v44, %v966_v34 }
 0x325   : > { %v1669_v16 = vpop.eup %1668 }
 0x326   : > { %v1671_v61 = vpop.eup %1670  ;;  %v889_v27 = vadd.f32 1.0, %v1669_v16  ;;  %v939_v16 = vmul.f32 %v937_v63, %v928_v10 }
 0x327   : > { %v890_v24 = vadd.f32 1.0, %v1671_v61  ;;  %v1012_v61 = vpop.permute.xlu1 %1011 }
 0x328   : > { %1672 = vrcp.f32 %v889_v27  ;;  %v1039_v31 = vadd.f32 %v953_v28, %v939_v16 }
 0x329   : > { %1674 = vrcp.f32 %v890_v24  ;;  %v952_v24 = vmul.f32 %v947_v2, %v942_v26 }
 0x32b   : > { %v1038_v46 = vadd.f32 %v952_v24, %v938_v35  ;;  %v1026_v58 = vpop.permute.xlu1 %1025 }
 0x332   : > { %v1673_v23 = vpop.eup %1672 }
 0x333   : > { %v1675_v54 = vpop.eup %1674  ;;  %v895_v51 = vmul.f32 %v1673_v23, %v2472_v40  ;;  %v1041_v23 = vadd.f32 %v981_v25, %v967_v59  ;;  %v1061_v25 = vpop.permute.xlu1 %1060 }
 0x334   : > { %v896_v30 = vmul.f32 %v1675_v54, %v2474_v12  ;;  %v998_v12 = vpop.permute.xlu0 %997 }
 0x335   : > { %v913_v27 = vmul.f32 %v911_v36, %v895_v51 }
 0x336   : > { %v914_v11 = vmul.f32 %v911_v36, %v896_v30  ;;  %v1046_v30 = vadd.f32 %v1040_v32, %v1038_v46 }
 0x337   : > { %v917_v43 = vadd.f32 %v915_v39, %v913_v27  ;;  %v1047_v27 = vadd.f32 %v1041_v23, %v1039_v31 }
 0x338   : > { %v918_v7 = vadd.f32 %v915_v39, %v914_v11  ;;  %v1055_v16 = vpop.permute.xlu0 %1054 }
 0x339   : > { %v919_v47 = vmax.f32 %v917_v43, 0.0 }
 0x33a   : > { %v920_v40 = vmax.f32 %v918_v7, 0.0 }
 0x33b   : > { %v989_v10 = vrot.slane %v919_v47, %v2240_v14  ;;  %v1017_v63 = vrot.slane %v919_v47, %v2242_v15  ;;  %v1003_v26 = vrot.slane %v919_v47, %v2248_v18  ;;  %v1031_v2 = vrot.slane %v919_v47, %v2250_v19 }
 0x33c   : > { %v993_v6 = vrot.slane %v920_v40, %v2240_v14  ;;  %v1021_v11 = vrot.slane %v920_v40, %v2242_v15  ;;  %v1007_v43 = vrot.slane %v920_v40, %v2248_v18  ;;  %v1035_v9 = vrot.slane %v920_v40, %v2250_v19 }
 0x33d   : > { %v994_v44 = vmul.f32 %v989_v10, %v984_v20  ;;  %v1022_v59 = vmul.f32 %v1017_v63, %v1012_v61  ;;  %v1008_v33 = vmul.f32 %v1003_v26, %v998_v12  ;;  %v1036_v37 = vmul.f32 %v1031_v2, %v1026_v58 }
 0x33e   : > { %v995_v62 = vmul.f32 %v993_v6, %v984_v20  ;;  %v1023_v3 = vmul.f32 %v1021_v11, %v1012_v61  ;;  %v1009_v45 = vmul.f32 %v1007_v43, %v998_v12  ;;  %v1037_v54 = vmul.f32 %v1035_v9, %v1026_v58 }
 0x33f   : > { %v1042_v51 = vadd.f32 %v1008_v33, %v994_v44  ;;  %v1044_v36 = vadd.f32 %v1036_v37, %v1022_v59 }
 0x340   : > { %v1043_v39 = vadd.f32 %v1009_v45, %v995_v62  ;;  %v1045_v47 = vadd.f32 %v1037_v54, %v1023_v3 }
 0x341   : > { %v1048_v35 = vadd.f32 %v1044_v36, %v1042_v51 }
 0x342   : > { %v1049_v24 = vadd.f32 %v1045_v47, %v1043_v39 }
 0x343   : > { %v1050_v28 = vadd.f32 %v1048_v35, %v1046_v30 }
 0x344   : > { %v1051_v34 = vadd.f32 %v1049_v24, %v1047_v27 }
 0x345   : > { %v1057_v7 = vmul.f32 %v1055_v16, %v1050_v28 }
 0x346   : > { %v1058_v40 = vmul.f32 %v1055_v16, %v1051_v34 }
 0x347   : > { %v1063_v10 = vadd.f32 %v1061_v25, %v1057_v7 }
 0x348   : > { %v1064_v63 = vadd.f32 %v1061_v25, %v1058_v40 }
 0x349   : > { %v2571_v20 = vmax.f32 %v1063_v10, 0.0 }
 0x34a   : > { %v2577_v46 = vmax.f32 %v1064_v63, 0.0 }
 0x34b   : > { %1082 = vrot.lane.b32.xlu0 %v2571_v20, %s1921_s11  ;;  %1067 = vrot.lane.b32.xlu1 %v2571_v20, %s1920_s12  ;;  %v1124_v59 = vmul.f32 %v2571_v20, %v2343_v41 }
 0x34c   : > { %v1125_v33 = vmul.f32 %v2577_v46, %v2346_v42 }
 0x34f   : > { %1096 = vrot.lane.b32.xlu0 %v2571_v20, %s1922_s17  ;;  %1069 = vrot.lane.b32.xlu1 %v2577_v46, %s1920_s12 }
 0x353   : > { %1110 = vrot.lane.b32.xlu0 %v2571_v20, %s1923_s21  ;;  %1084 = vrot.lane.b32.xlu1 %v2577_v46, %s1921_s11 }
 0x357   : > { %1132 = vrot.lane.b32.xlu0 %v2571_v20, %s1924_s24  ;;  %1098 = vrot.lane.b32.xlu1 %v2577_v46, %s1922_s17  ;;  %s2845_s17 = sld [smem:[#allocation23_spill]] }
 0x35b   : > { %1146 = vrot.lane.b32.xlu0 %v2571_v20, %s1925_s22  ;;  %1112 = vrot.lane.b32.xlu1 %v2577_v46, %s1923_s21  ;;  %s1497_s21 = sshll.u32 %s2200_s1, 4 }
 0x35d   : > { %v923_v61 = vld [vmem:[%s2845_s17] sm:$0xf] }
 0x35f   : > { %1160 = vrot.lane.b32.xlu0 %v2571_v20, %s1926_s28  ;;  %1134 = vrot.lane.b32.xlu1 %v2577_v46, %s1924_s24  ;;  %s2717_s24 = scalar_lea.vmem [#allocation11], %s1497_s21 }
 0x363   : > { %1183 = vperm.xlu0 %1656, %v2501_v57   ;;  %1148 = vrot.lane.b32.xlu1 %v2577_v46, %s1925_s22  ;;  %v2623_v57 = vpop.permute.xlu1 %1077  ;;  %s1510_s22 = sshll.u32 %s2005_s19, 8  ;;  %s1928_s19 = smov [#allocation11]  }
 0x364   : > { %s2728_s20 = scalar_lea.hbm %s2852_s25, %s1510_s22  ;;  %s1832_s12 = sshll.u32 %s1928_s19, 4  ;;  %s1833_s12 = int_to_ptr.vmem [resolvable:$false] %s1832_s12 }
 0x365   : > { %s1834_s11 = scalar_lea.vmem %s1833_s12, 512 }
 0x367   : > { %1657 = vset.pattern.permute.xlu0 %v2843_v5  ;;  %1162 = vrot.lane.b32.xlu1 %v2577_v46, %s1926_s28  ;;  %s1373_s28 = sshll.u32 %s2717_s24, 4  ;;  %s2730_s28 = int_to_ptr.vmem [resolvable:$true] %s1373_s28 }
 0x368   : > { %1205 = vperm.xlu0 %1657, %v2494_v29   ;;  %s1828_s30 = scalar_lea.vmem %s2730_s28, 256  ;;  %p1835_p12 = scmp.lt.s32.totalorder %s2730_s28, %s1833_s12 }
 0x369   : > { %p1829_p6 = scmp.ne.s32.totalorder %s2730_s28, %s1828_s30  ;;  %p1836_p3 = scmp.lt.s32.totalorder %s1834_s11, %s1828_s30 }
 0x36b   : > { %1174 = vrot.lane.b32.xlu1 %v2571_v20, %s1927_s29  ;;  %p1830_p7 = pnand %p1829_p6, %p2853_p5  ;;  %p1837_p13 = por %p1836_p3, %p1835_p12 }
 0x36c   : > { %1659 = vset.pattern.permute.xlu0 %v2842_v4 }
 0x36d   : > { %1226 = vperm.xlu0 %1659, %v923_v61   ;;  %p1831_p9 = pneg %p1830_p7 }
 0x36f   : > { %1176 = vrot.lane.b32.xlu1 %v2577_v46, %s1927_s29  ;;  %p1838_p0 = pnand %p1837_p13, %p1831_p9 }
 0x371   : > { %1660 = vset.pattern.permute.xlu0 %v2838_v21  ;;  %v2625_v21 = vpop.permute.xlu1 %1105 }
 0x372   : > { %1240 = vperm.xlu0 %1660, %v923_v61  }
 0x373   : > { %1211 = vperm.xlu1 %1658, %v2494_v29  }
 0x375   : > { %v1120_v4 = vpop.permute.xlu1 %1119 }
 0x376   : > { %1661 = vset.pattern.permute.xlu0 %v2843_v5  ;;  %v2627_v5 = vpop.permute.xlu0 %1091 }
 0x377   : > { %1254 = vperm.xlu0 %1661, %v923_v61   ;;  %1664 = vset.pattern.permute.xlu1 %v2844_v8 }
 0x379   : > { %v1142_v31 = vpop.permute.xlu1 %1141 }
 0x37a   : > { %v1128_v8 = vpop.permute.xlu0 %1127 }
 0x37b   : > { %1662 = vset.pattern.permute.xlu0 %v2839_v13 }
 0x37c   : > { %1268 = vperm.xlu0 %1662, %v923_v61  }
 0x37d   : > { %v1156_v13 = vpop.permute.xlu1 %1155 }
 0x37e   : > { %v1170_v32 = vpop.permute.xlu0 %1169 }
 0x380   : > { %1663 = vset.pattern.permute.xlu0 %v2840_v0 }
 0x381   : > { %1288 = vperm.xlu0 %1663, %v2494_v29  }
 0x385   : > { %1665 = vset.pattern.permute.xlu0 %v2841_v1 }
 0x386   : > { %1331 = vperm.xlu0 %1665, %v2494_v29  }
 0x3bd   : > { %v1083_v23 = vpop.permute.xlu0 %1082  ;;  %v1068_v12 = vpop.permute.xlu1 %1067 }
 0x3c1   : > { %v1097_v0 = vpop.permute.xlu0 %1096  ;;  %v1070_v58 = vpop.permute.xlu1 %1069 }
 0x3c2   : > { %v1071_v37 = vsel %vm562_vm0, %v1068_v12, %v1070_v58  ;;  %v1072_v62 = vsel %vm562_vm0, %v1070_v58, %v1068_v12  ;;  %v1131_v12 = vmul.f32 %v1128_v8, %v1125_v33 }
 0x3c5   : > { %v1085_v26 = vpop.permute.xlu1 %1084  ;;  %v1111_v2 = vpop.permute.xlu0 %1110 }
 0x3c6   : > { %v1086_v28 = vsel %vm586_vm1, %v1083_v23, %v1085_v26  ;;  %v1087_v34 = vsel %vm586_vm1, %v1085_v26, %v1083_v23  ;;  %v2846_v23 = vld [vmem:[#allocation18_spill] sm:$0xff] }
 0x3c7   : > { %v1088_v26 = vmul.f32 %v1087_v34, %v2846_v23 }
 0x3c9   : > { %v1099_v1 = vpop.permute.xlu1 %1098  ;;  %v1133_v6 = vpop.permute.xlu0 %1132 }
 0x3ca   : > { %v1100_v35 = vsel %vm609_vm2, %v1097_v0, %v1099_v1  ;;  %v1101_v16 = vsel %vm609_vm2, %v1099_v1, %v1097_v0 }
 0x3cb   : > { %v1102_v0 = vmul.f32 %v1101_v16, %v2364_v17  ;;  %v1103_v58 = vmul.f32 %v1100_v35, %v2367_v48 }
 0x3cd   : > { %v1113_v11 = vpop.permute.xlu1 %1112  ;;  %v1147_v9 = vpop.permute.xlu0 %1146  ;;  %v1108_v17 = vmul.f32 %v2625_v21, %v1102_v0  ;;  %v1109_v48 = vmul.f32 %v2625_v21, %v1103_v58 }
 0x3ce   : > { %v1114_v3 = vsel %vm632_vm3, %v1111_v2, %v1113_v11  ;;  %v1115_v45 = vsel %vm632_vm3, %v1113_v11, %v1111_v2 }
 0x3cf   : > { %v1116_v25 = vmul.f32 %v1115_v45, %v2371_v49  ;;  %v1117_v7 = vmul.f32 %v1114_v3, %v2374_v50  ;;  %v2847_v49 = vld [vmem:[#allocation19_spill] sm:$0xff] }
 0x3d0   : > { %v1089_v2 = vmul.f32 %v1086_v28, %v2847_v49 }
 0x3d1   : > { %v1135_v43 = vpop.permute.xlu1 %1134  ;;  %v1161_v54 = vpop.permute.xlu0 %1160 }
 0x3d2   : > { %v1136_v51 = vsel %vm671_vm4, %v1133_v6, %v1135_v43  ;;  %v1137_v41 = vsel %vm671_vm4, %v1135_v43, %v1133_v6  ;;  %v1123_v43 = vmul.f32 %v1120_v4, %v1117_v7 }
 0x3d3   : > { %v1138_v40 = vmul.f32 %v1136_v51, %v2380_v52  ;;  %v1139_v10 = vmul.f32 %v1137_v41, %v2383_v53  ;;  %v2848_v52 = vld [vmem:[#allocation16_spill] sm:$0xff]  ;;  %v2849_v53 = vld [vmem:[#allocation17_spill] sm:$0xff] }
 0x3d4   : > { %v1073_v6 = vmul.f32 %v1072_v62, %v2848_v52  ;;  %v1074_v11 = vmul.f32 %v1071_v37, %v2849_v53  ;;  %v1094_v62 = vmul.f32 %v2627_v5, %v1088_v26  ;;  %v1095_v37 = vmul.f32 %v2627_v5, %v1089_v2  ;;  %v2850_v41 = vld [vmem:[#allocation20_spill] sm:$0xff] }
 0x3d5   : > { %v1149_v44 = vpop.permute.xlu1 %1148 }
 0x3d6   : > { %v1150_v36 = vsel %vm694_vm5, %v1147_v9, %v1149_v44  ;;  %v1151_v39 = vsel %vm694_vm5, %v1149_v44, %v1147_v9  ;;  %v1145_v9 = vmul.f32 %v1142_v31, %v1139_v10 }
 0x3d7   : > { %v1152_v63 = vmul.f32 %v1150_v36, %v2387_v55  ;;  %v1122_v55 = vmul.f32 %v1120_v4, %v1116_v25  ;;  %v2851_v36 = vld [vmem:[#allocation21_spill] sm:$0xff] }
 0x3d8   : > { %v1193_v21 = vadd.f32 %v1145_v9, %v1131_v12 }
 0x3d9   : > { %v1163_v42 = vpop.permute.xlu1 %1162  ;;  %v1158_v44 = vmul.f32 %v1156_v13, %v1152_v63  ;;  %v1190_v45 = vadd.f32 %v1122_v55, %v1108_v17 }
 0x3da   : > { %v1164_v47 = vsel %vm717_vm6, %v1161_v54, %v1163_v42  ;;  %v1165_v30 = vsel %vm717_vm6, %v1163_v42, %v1161_v54  ;;  %v1191_v54 = vadd.f32 %v1123_v43, %v1109_v48 }
 0x3db   : > { %v1166_v27 = vmul.f32 %v1164_v47, %v2398_v22  ;;  %v1167_v24 = vmul.f32 %v1165_v30, %v2401_v60  ;;  %v1153_v22 = vmul.f32 %v1151_v39, %v2390_v56  ;;  %v1130_v60 = vmul.f32 %v1128_v8, %v1124_v59 }
 0x3dc   : > { %v1144_v56 = vmul.f32 %v1142_v31, %v1138_v40  ;;  %v1080_v31 = vmul.f32 %v2623_v57, %v1073_v6 }
 0x3dd   : > { %v1175_v61 = vpop.permute.xlu1 %1174  ;;  %v1172_v50 = vmul.f32 %v1170_v32, %v1166_v27  ;;  %v1173_v1 = vmul.f32 %v1170_v32, %v1167_v24  ;;  %v1159_v8 = vmul.f32 %v1156_v13, %v1153_v22  ;;  %v1081_v13 = vmul.f32 %v2623_v57, %v1074_v11 }
 0x3de   : > { %v1192_v51 = vadd.f32 %v1144_v56, %v1130_v60  ;;  %v1188_v47 = vadd.f32 %v1094_v62, %v1080_v31 }
 0x3df   : > { %v1194_v4 = vadd.f32 %v1172_v50, %v1158_v44  ;;  %v1195_v3 = vadd.f32 %v1173_v1, %v1159_v8  ;;  %v1189_v30 = vadd.f32 %v1095_v37, %v1081_v13 }
 0x3e0   : > { %v1196_v24 = vadd.f32 %v1190_v45, %v1188_v47 }
 0x3e1   : > { %v1177_v59 = vpop.permute.xlu1 %1176  ;;  %v1198_v35 = vadd.f32 %v1194_v4, %v1192_v51  ;;  %v1199_v16 = vadd.f32 %v1195_v3, %v1193_v21  ;;  %v1197_v28 = vadd.f32 %v1191_v54, %v1189_v30 }
 0x3e2   : > { %v1178_v33 = vsel %vm740_vm7, %v1175_v61, %v1177_v59  ;;  %v1179_v32 = vsel %vm740_vm7, %v1177_v59, %v1175_v61  ;;  %v1184_v38 = vpop.permute.xlu0 %1183 }
 0x3e3   : > { %v1180_v42 = vmul.f32 %v2850_v41, %v1178_v33  ;;  %v1181_v39 = vmul.f32 %v2851_v36, %v1179_v32  ;;  %v1200_v34 = vadd.f32 %v1198_v35, %v1196_v24  ;;  %v1201_v25 = vadd.f32 %v1199_v16, %v1197_v28 }
 0x3e5   : > { %v1186_v5 = vmul.f32 %v1184_v38, %v1180_v42  ;;  %v1187_v27 = vmul.f32 %v1184_v38, %v1181_v39 }
 0x3e7   : > { %v1202_v57 = vadd.f32 %v1200_v34, %v1186_v5  ;;  %v1203_v7 = vadd.f32 %v1201_v25, %v1187_v27  ;;  %v1206_v40 = vpop.permute.xlu0 %1205 }
 0x3e9   : > { %v1208_v10 = vmul.f32 %v1206_v40, %v1202_v57  ;;  %v1209_v63 = vmul.f32 %v1206_v40, %v1203_v7 }
 0x3ec   : > { %v1227_v49 = vpop.permute.xlu0 %1226 }
 0x3f1   : > { %v1241_v2 = vpop.permute.xlu0 %1240 }
 0x3f2   : > { %v1212_v22 = vpop.permute.xlu1 %1211 }
 0x3f3   : > { %v1214_v61 = vadd.f32 %v1212_v22, %v1208_v10  ;;  %v1215_v60 = vadd.f32 %v1212_v22, %v1209_v63 }
 0x3f5   : > { %v2687_v12 = vmax.f32 %v1214_v61, 0.0  ;;  %v2689_v0 = vmax.f32 %v1215_v60, 0.0 }
 0x3f6   : > { %v1255_v50 = vpop.permute.xlu0 %1254 }
 0x3f7   : > { %v1218_v58 = vsel %vm789_vm8, %v2687_v12, 0.0  ;;  %v1219_v23 = vsel %vm789_vm8, %v2689_v0, 0.0  ;;  %v1232_v1 = vrot.slane %v2687_v12, %v2240_v14  ;;  %v1236_v52 = vrot.slane %v2689_v0, %v2240_v14 }
 0x3f8   : > { %v1220_v26 = vadd.f32 %v1219_v23, %v1218_v58  ;;  %v1246_v6 = vrot.slane %v2687_v12, %v2248_v18  ;;  %v1250_v53 = vrot.slane %v2689_v0, %v2248_v18  ;;  %v1260_v55 = vrot.slane %v2687_v12, %v2242_v15 }
 0x3f9   : > { %v1264_v43 = vrot.slane %v2689_v0, %v2242_v15  ;;  %v1274_v56 = vrot.slane %v2687_v12, %v2250_v19  ;;  %v1278_v9 = vrot.slane %v2689_v0, %v2250_v19  ;;  %v1237_v8 = vmul.f32 %v1232_v1, %v1227_v49 }
 0x3fa   : > { %1221 = vadd.xlane.f32.xlu1 %v1220_v26  ;;  %v1238_v59 = vmul.f32 %v1236_v52, %v1227_v49  ;;  %v1251_v17 = vmul.f32 %v1246_v6, %v1241_v2  ;;  %v1252_v48 = vmul.f32 %v1250_v53, %v1241_v2  ;;  %v1265_v18 = vmul.f32 %v1260_v55, %v1255_v50 }
 0x3fb   : > { %v1269_v11 = vpop.permute.xlu0 %1268  ;;  %v1266_v33 = vmul.f32 %v1264_v43, %v1255_v50 }
 0x3fc   : > { %v1279_v14 = vmul.f32 %v1274_v56, %v1269_v11  ;;  %v1280_v44 = vmul.f32 %v1278_v9, %v1269_v11  ;;  %v1281_v37 = vadd.f32 %v1251_v17, %v1237_v8  ;;  %v1282_v4 = vadd.f32 %v1252_v48, %v1238_v59 }
 0x3fe   : > { %v1283_v32 = vadd.f32 %v1279_v14, %v1265_v18  ;;  %v1284_v62 = vadd.f32 %v1280_v44, %v1266_v33 }
 0x400   : > { %v1285_v3 = vadd.f32 %v1283_v32, %v1281_v37  ;;  %v1286_v15 = vadd.f32 %v1284_v62, %v1282_v4  ;;  %v1289_v31 = vpop.permute.xlu0 %1288 }
 0x402   : > { %v1291_v45 = vadd.f32 %v1289_v31, %v1285_v3  ;;  %v1292_v54 = vadd.f32 %v1289_v31, %v1286_v15 }
 0x405   : > { %v1332_v5 = vpop.permute.xlu0 %1331 }
 0x406   : > { %v1342_v1 = vrot.slane %v1332_v5, 4 }
 0x487   : > { %v1222_v13 = vpop.xlane.xlu1 %1221 }
 0x488   : > { %v1223_v51 = vmul.f32 0.00390625, %v1222_v13 }
 0x48a   : > { %v1293_v19 = vsub.f32 %v1291_v45, %v1223_v51  ;;  %v1294_v21 = vsub.f32 %v1292_v54, %v1223_v51 }
 0x48c   : > { %v1295_v41 = vmul.f32 %v1293_v19, %v1293_v19  ;;  %v1296_v42 = vmul.f32 %v1294_v21, %v1294_v21 }
 0x48e   : > { %v1297_v36 = vsel %vm789_vm8, %v1295_v41, 0.0  ;;  %v1298_v39 = vsel %vm789_vm8, %v1296_v42, 0.0 }
 0x48f   : > { %v1299_v38 = vadd.f32 %v1298_v39, %v1297_v36 }
 0x491   : > { %1300 = vadd.xlane.f32.xlu1 %v1299_v38 }
 0x4a2   : > { %1325 = vperm.xlu1 %1664, %v2494_v29  }
 0x51e   : > { %v1301_v47 = vpop.xlane.xlu1 %1300 }
 0x51f   : > { %v1302_v30 = vmul.f32 0.00390625, %v1301_v47 }
 0x521   : > { %v1303_v35 = vmul.f32 2.0, %v1302_v30 }
 0x522   : > { %v1326_v16 = vpop.permute.xlu1 %1325 }
 0x523   : > { %v1304_v27 = vadd.f32 1.1920929e-07, %v1303_v35  ;;  %v1328_v24 = vmul.f32 %v1326_v16, %v2571_v20  ;;  %v1329_v28 = vmul.f32 %v1326_v16, %v2577_v46  ;;  %v1338_v26 = vrot.slane %v1326_v16, 4 }
 0x525   : > { %1676 = vrcp.f32 %v1304_v27  ;;  %v1334_v34 = vadd.f32 %v1332_v5, %v1328_v24  ;;  %v1335_v25 = vadd.f32 %v1332_v5, %v1329_v28 }
 0x527   : > { %v1336_v57 = vmax.f32 %v1334_v34, 0.0  ;;  %v1337_v7 = vmax.f32 %v1335_v25, 0.0 }
 0x529   : > { %1348 = vst [vmem:[%s2717_s24] sm:$0xf] %v1336_v57  ;;  %1349 = vst [vmem:[%s2717_s24 + $0x8] sm:$0xf] %v1337_v7 }
 0x52f   : > { %v1677_v29 = vpop.eup %1676 }
 0x530   : > { %v1306_v40 = vmul.f32 %v1677_v29, %v1295_v41  ;;  %v1307_v10 = vmul.f32 %v1677_v29, %v1296_v42 }
 0x532   : > { %v1308_v63 = vadd.f32 0.5, %v1306_v40  ;;  %v1309_v22 = vadd.f32 0.5, %v1307_v10 }
 0x534   : > { %v1502_v20 = vmul.f32 -1.442695, %v1308_v63  ;;  %v1503_v61 = vmul.f32 -1.442695, %v1309_v22 }
 0x536   : > { %1678 = vpow2.f32 %v1502_v20 }
 0x537   : > { %1680 = vpow2.f32 %v1503_v61 }
 0x540   : > { %v1679_v46 = vpop.eup %1678 }
 0x541   : > { %v1681_v60 = vpop.eup %1680  ;;  %v1316_v58 = vadd.f32 1.0, %v1679_v46 }
 0x542   : > { %v1317_v23 = vadd.f32 1.0, %v1681_v60 }
 0x543   : > { %1682 = vrcp.f32 %v1316_v58 }
 0x544   : > { %1684 = vrcp.f32 %v1317_v23 }
 0x54d   : > { %v1683_v49 = vpop.eup %1682 }
 0x54e   : > { %v1685_v2 = vpop.eup %1684  ;;  %v1322_v50 = vmul.f32 %v1683_v49, %v2687_v12 }
 0x54f   : > { %v1323_v52 = vmul.f32 %v1685_v2, %v2689_v0 }
 0x550   : > { %v1340_v6 = vmul.f32 %v1338_v26, %v1322_v50 }
 0x551   : > { %v1341_v53 = vmul.f32 %v1338_v26, %v1323_v52 }
 0x552   : > { %v1344_v11 = vadd.f32 %v1342_v1, %v1340_v6 }
 0x553   : > { %v1345_v55 = vadd.f32 %v1342_v1, %v1341_v53 }
 0x554   : > { %v1346_v43 = vmax.f32 %v1344_v11, 0.0 }
 0x555   : > { %v1347_v56 = vmax.f32 %v1345_v55, 0.0 }
 0x556   : > { %v1352_v9 = vrot.slane %v1346_v43, 4 }
 0x557   : > { %v1353_v14 = vrot.slane %v1347_v56, 4 }
 0x558   : > { %1356 = vst [vmem:[%s2717_s24] sm:$0xf0] %v1352_v9 }
 0x559   : > { %1357 = vst [vmem:[%s2717_s24 + $0x8] sm:$0xf0] %v1353_v14 }
 0x55a   : > { %1841 = shalt.err (!%p1838_p0)
}
 0x55b   : > { %s1842_s1 = scalar_lea.hbm %s2728_s20, 256  ;;  %s1846_s24 = scalar_lea.hbm %s2852_s25, 512 }
 0x55c   : > { %p1843_p2 = scmp.ne.s32.totalorder %s2728_s20, %s1842_s1  ;;  %p1847_p10 = scmp.lt.u32.totalorder %s2728_s20, %s2852_s25 }
 0x55d   : > { %p1848_p11 = scmp.lt.u32.totalorder %s1846_s24, %s1842_s1  ;;  %p1850_p6 = scmp.lt.u32.totalorder %s1842_s1, %s2728_s20 }
 0x55e   : > { %p1844_p8 = pnand %p1843_p2, %p2853_p5 }
 0x55f   : > { %p1849_p1 = por %p1848_p11, %p1847_p10 }
 0x560   : > { %p1845_p4 = pneg %p1844_p8 }
 0x561   : > { %p1851_p7 = por %p1850_p6, %p1849_p1 }
 0x563   : > { %p1852_p9 = pnand %p1851_p7, %p1845_p4 }
 0x565   : > { %1855 = shalt.err (!%p1852_p9)
}
 0x566   : > { %1529 = dma.vmem_to_hbm [thread:$0]  (%p2853_p5), %s2730_s28, 256, %s2728_s20, %s1359_s8  }
 0x567 PF: > { %s1385_s10 = sand.u32 1, %s1890_s13   ;;  %p2854_p12 = scmp.ne.s32.totalorder %s2823_s27, 0 }
 0x568   : > { %p2855_p3 = scmp.ge.s32.totalorder %s1902_s16, 2  ;;  %s1386_s30 = scalar_lea.sflag [#allocation4], %s1385_s10 }
 0x56a   : > { %p1549_p13 = pnand %p2855_p3, %p2854_p12 }
 0x56c   : > { %1885 = dma.done.wait (!%p1549_p13), %s1386_s30, 256  }
 0x56d   : > { %1887 = vsyncadd (!%p1549_p13), %s1386_s30, 4294967040  ;;  %p25_p0 = scmp.ge.s32.totalorder %s2124_s23, 4   ;;  %s2856_s13 = smov %s1894_s14 }
 0x56e   : > { %s2857_s14 = smov %s1898_s15  ;;  %s2858_s15 = smov %s2135_s18 }
 0x56f   : > { %s2859_s16 = smov %s2124_s23  ;;  %27 = sbr.rel (!%p25_p0) target bundleno = 11 (0xb), region = 121 }
 0x576   :  { %1391 = vsyncpa [#allocation3], 1 }
 0x577   :  { %1393 = vsyncpa [#allocation3 + $0x1], 1 }
 0x578   :  { %1394 = vsyncpa [#allocation6], 1 }
 0x579   :  { %1395 = vsyncpa [#allocation9], 1 }
 0x57a   :  { %1396 = vsyncpa [#allocation4], 1 }
 0x57b   :  { %1398 = vsyncpa [#allocation4 + $0x1], 1 }

</bundles_post_ra>
